<compile_context>
chip_gen: v7x
topology: tpu7x:2x2x1
jax: 0.10.0
libtpu: 0.0.40
codegen_flags: <defaults>
</compile_context>

<pallas_src>
import numpy as np
import jax
import jax.numpy as jnp
from jax.experimental import pallas as pl
from jax.experimental.pallas import tpu as pltpu


def _rbf_sigma(centers: np.ndarray, use_avg_dist: bool) -> float:
    """Replicates the sigma computation in RBFLayer.__init__ (incl. self-pairs)."""
    n = centers.shape[0]
    dists = [float(np.linalg.norm(c1 - c2)) for c1 in centers for c2 in centers]
    d_max = max(dists)
    d_avg = sum(dists) / len(dists)
    if use_avg_dist:
        return 2.0 * d_avg
    return d_max / float(np.sqrt(n))


def _round_up(n: int, m: int) -> int:
    return ((n + m - 1) // m) * m


def _rbfnet2_kernel(x_ref, c1t2_ref, c1sq_ref, s1_ref, w1_ref, b1_ref,
                    c2t2_ref, c2sq_ref, s2_ref, w2_ref, b2_ref, o_ref):
    f32 = jnp.float32
    x = x_ref[...]                                              # (TB, F) f32

    # ----- RBF layer 1: ||x - mu||^2 = ||x||^2 - x @ (2 mu^T) + ||mu||^2 -----
    # (factor 2 folded into c1t2 by the wrapper; distance matmul kept in f32
    #  to avoid cancellation; clamp at 0 before sqrt).
    xsq = jnp.sum(x * x, axis=1, keepdims=True)                 # (TB, 1)
    xc2 = jnp.dot(x, c1t2_ref[...], preferred_element_type=f32)  # (TB, C1p) MXU
    d1sq = jnp.maximum(xsq - xc2 + c1sq_ref[...], 0.0)
    phi1 = jnp.exp(-s1_ref[0, 0] * jnp.sqrt(d1sq))              # (TB, C1p)
    # TODO(synk): on v6e/v7x a packed-bf16 sqrt/exp path could ~2x EUP throughput.

    # ----- Linear 1 (weights pre-cast in the wrapper; f32 accumulation) -----
    h1 = jnp.dot(phi1.astype(w1_ref.dtype), w1_ref[...],
                 preferred_element_type=f32) + b1_ref[...]      # (TB, C2p)

    # ----- RBF layer 2 (same squared-norm expansion, f32) -----
    hsq = jnp.sum(h1 * h1, axis=1, keepdims=True)               # (TB, 1)
    hc2 = jnp.dot(h1, c2t2_ref[...], preferred_element_type=f32)  # (TB, C2p)
    d2sq = jnp.maximum(hsq - hc2 + c2sq_ref[...], 0.0)
    phi2 = jnp.exp(-s2_ref[0, 0] * jnp.sqrt(d2sq))              # (TB, C2p)

    # ----- Linear 2: lane-dense (Op-padded) MXU matmul, then slice to the true
    # O columns so only B*O values are ever written back to HBM -----
    out = jnp.dot(phi2.astype(w2_ref.dtype), w2_ref[...],
                  preferred_element_type=f32)                   # (TB, Op)
    o_ref[...] = (out[:, :o_ref.shape[1]] + b2_ref[...]).astype(o_ref.dtype)


def rbfnet2_prepare(params, *, use_bf16_mxu=False):
    """One-time parameter preparation (pad / transpose / fold / pre-cast).

    params = (centers1 (C1,F), sigma1 (1,C1), W1 (C1,C2), b1 (C2,) or (1,C2),
              centers2 (C2,C2), sigma2 (1,C2), W2 (C2,O), b2 (O,) or (1,O))
    """
    c1, s1, w1, b1, c2, s2, w2, b2 = params
    f32 = jnp.float32
    mxu = jnp.bfloat16 if use_bf16_mxu else f32

    c1 = jnp.asarray(c1, f32)
    c2 = jnp.asarray(c2, f32)
    w1 = jnp.asarray(w1, f32)
    w2 = jnp.asarray(w2, f32)
    C1, F = c1.shape
    C2, F2 = c2.shape
    if F2 != C2:
        raise ValueError("centers2 feature dim must equal len(centers2) "
                         "(it is the output width of linear1).")
    O = w2.shape[1]

    # The module builds sigma with torch.full -> uniform; the kernel reads a
    # single SMEM scalar, so reject non-uniform (e.g. learned) sigmas.
    def _uniform_scalar(s, name):
        s_np = np.asarray(s, dtype=np.float32).reshape(-1)
        if not np.all(s_np == s_np[0]):
            raise ValueError(f"{name} must be uniform across centers")
        return jnp.full((1, 1), float(s_np[0]), f32)

    s1s = _uniform_scalar(s1, "sigma1")
    s2s = _uniform_scalar(s2, "sigma2")

    LANE = 128
    C1p = _round_up(C1, LANE)
    C2p = _round_up(C2, LANE)
    Op = _round_up(O, LANE)

    # Zero padding is semantics-preserving: padded "fake" centers get zero
    # weight rows (no contribution), padded h1 feature columns are exactly
    # zero, padded output columns of W2 are sliced off inside the kernel.
    c1t2 = jnp.zeros((F, C1p), f32).at[:, :C1].set(2.0 * c1.T)
    c1sq = jnp.zeros((1, C1p), f32).at[:, :C1].set(jnp.sum(c1 * c1, axis=1)[None, :])
    w1p = jnp.zeros((C1p, C2p), mxu).at[:C1, :C2].set(w1.astype(mxu))
    b1p = jnp.zeros((1, C2p), f32).at[:, :C2].set(jnp.reshape(jnp.asarray(b1, f32), (1, C2)))
    c2t2 = jnp.zeros((C2p, C2p), f32).at[:C2, :C2].set(2.0 * c2.T)
    c2sq = jnp.zeros((1, C2p), f32).at[:, :C2].set(jnp.sum(c2 * c2, axis=1)[None, :])
    w2p = jnp.zeros((C2p, Op), mxu).at[:C2, :O].set(w2.astype(mxu))
    b2p = jnp.reshape(jnp.asarray(b2, f32), (1, O))

    return (c1t2, c1sq, s1s, w1p, b1p, c2t2, c2sq, s2s, w2p, b2p)


def rbfnet2_forward(x, prepared, *, batch_tile=512):
    """x: (B, F) float. Returns (B,) if outFeatures == 1 else (B, O)."""
    c1t2, c1sq, s1s, w1p, b1p, c2t2, c2sq, s2s, w2p, b2p = prepared
    f32 = jnp.float32
    x = jnp.asarray(x, f32)
    B, F = x.shape
    if F != c1t2.shape[0]:
        raise ValueError("x feature dim does not match centers1")
    C1p = c1t2.shape[1]
    C2p = c2t2.shape[1]
    Op = w2p.shape[1]
    O = b2p.shape[1]

    # Batch tile: multiple of 8; prefer >=2 grid steps (v7x has 2 TensorCores
    # and the batch axis is marked "parallel" so it shards across them).
    TB = min(batch_tile, _round_up(B, 8))
    if B > 8 and pl.cdiv(B, TB) < 2:
        TB = max(8, _round_up(pl.cdiv(B, 2), 8))
    grid = (pl.cdiv(B, TB),)

    def const_spec(shape, single_buffer):
        # Whole-array parameter, same block every grid step -> stays resident
        # in VMEM; single-buffered when supported (nothing to pipeline).
        if single_buffer:
            return pl.BlockSpec(shape, lambda i: (0,) * len(shape),
                                pipeline_mode=pl.Buffered(1))
        return pl.BlockSpec(shape, lambda i: (0,) * len(shape))

    def smem_scalar_spec():
        return pl.BlockSpec((1, 1), lambda i: (0, 0),
                            memory_space=pltpu.MemorySpace.SMEM)

    def build(single_buffer):
        return pl.pallas_call(
            _rbfnet2_kernel,
            out_shape=jax.ShapeDtypeStruct((B, O), f32),
            grid=grid,
            in_specs=[
                pl.BlockSpec((TB, F), lambda i: (i, 0)),   # x, true feature width
                const_spec((F, C1p), single_buffer),       # 2 * centers1^T
                const_spec((1, C1p), single_buffer),       # ||centers1||^2
                smem_scalar_spec(),                        # sigma1
                const_spec((C1p, C2p), single_buffer),     # W1 (pre-cast)
                const_spec((1, C2p), single_buffer),       # b1
                const_spec((C2p, C2p), single_buffer),     # 2 * centers2^T
                const_spec((1, C2p), single_buffer),       # ||centers2||^2
                smem_scalar_spec(),                        # sigma2
                const_spec((C2p, Op), single_buffer),      # W2 (lane padded, pre-cast)
                const_spec((1, O), single_buffer),         # b2 (true width)
            ],
            out_specs=pl.BlockSpec((TB, O), lambda i: (i, 0)),
            compiler_params=pltpu.CompilerParams(
                dimension_semantics=("parallel",),
                vmem_limit_bytes=32 * 1024 * 1024),
        )

    args = (x, c1t2, c1sq, s1s, w1p, b1p, c2t2, c2sq, s2s, w2p, b2p)
    try:
        out = build(True)(*args)
    except Exception:
        # Some JAX/Mosaic versions reject Buffered(1); fall back to the default
        # double-buffering (costs only VMEM, results identical).
        out = build(False)(*args)

    if O == 1:
        out = jnp.squeeze(out, axis=1)                     # torch `x.squeeze(1)`
    return out


def _reference_forward(x, params):
    """Pure-JAX reference mirroring the PyTorch module, for verification."""
    c1, s1, w1, b1, c2, s2, w2, b2 = params
    d1 = jnp.sqrt(jnp.sum((x[:, None, :] - c1[None, :, :]) ** 2, axis=2))
    phi1 = jnp.exp(-(s1 * d1))
    h1 = phi1 @ w1 + b1
    d2 = jnp.sqrt(jnp.sum((h1[:, None, :] - c2[None, :, :]) ** 2, axis=2))
    phi2 = jnp.exp(-(s2 * d2))
    out = phi2 @ w2 + b2
    if out.shape[1] == 1:
        out = jnp.squeeze(out, axis=1)
    return out


if __name__ == "__main__":
    # Small, module-consistent shapes.
    B = 20            # batch (not a tile multiple -> exercises ragged blocks)
    F = 16            # inFeatures
    C1 = 32           # len(centers1)
    C2 = 16           # len(centers2)  (centers2 feature dim must equal C2)
    O = 1             # outFeatures (squeeze(1) -> (B,))
    use_avg_dist = False

    key = jax.random.PRNGKey(0)
    kx, kc1, kc2, kw1, kb1, kw2, kb2 = jax.random.split(key, 7)

    centers1_np = np.asarray(jax.random.normal(kc1, (C1, F), dtype=jnp.float32))
    centers2_np = np.asarray(jax.random.normal(kc2, (C2, C2), dtype=jnp.float32))
    sigma1_val = _rbf_sigma(centers1_np, use_avg_dist)
    sigma2_val = _rbf_sigma(centers2_np, use_avg_dist)

    c1 = jnp.asarray(centers1_np, dtype=jnp.float32)                 # (C1, F)
    s1 = jnp.full((1, C1), sigma1_val, dtype=jnp.float32)            # (1, C1)
    c2 = jnp.asarray(centers2_np, dtype=jnp.float32)                 # (C2, C2)
    s2 = jnp.full((1, C2), sigma2_val, dtype=jnp.float32)            # (1, C2)

    # nn.Linear-style parameters (stored as (in, out) for the kernel matmul).
    lim1 = 1.0 / np.sqrt(C1)
    w1 = jax.random.uniform(kw1, (C1, C2), jnp.float32, -lim1, lim1)
    b1 = jax.random.uniform(kb1, (1, C2), jnp.float32, -lim1, lim1)
    lim2 = 1.0 / np.sqrt(C2)
    w2 = jax.random.uniform(kw2, (C2, O), jnp.float32, -lim2, lim2)
    b2 = jax.random.uniform(kb2, (1, O), jnp.float32, -lim2, lim2)

    params = (c1, s1, w1, b1, c2, s2, w2, b2)
    x = jax.random.normal(kx, (B, F), dtype=jnp.float32)

    y_ref = jax.block_until_ready(_reference_forward(x, params))

    # f32 path: default batch_tile (forced to >=2 grid steps), then a small
    # tile that exercises multi-step / ragged boundary handling.
    prep = rbfnet2_prepare(params)
    y = jax.block_until_ready(rbfnet2_forward(x, prep))
    np.testing.assert_allclose(np.asarray(y), np.asarray(y_ref),
                               rtol=1e-4, atol=1e-5)

    y2 = jax.block_until_ready(rbfnet2_forward(x, prep, batch_tile=8))
    np.testing.assert_allclose(np.asarray(y2), np.asarray(y_ref),
                               rtol=1e-4, atol=1e-5)

    # bf16 path (linear-layer matmuls only; distances stay f32) — loose check.
    prep_bf16 = rbfnet2_prepare(params, use_bf16_mxu=True)
    y3 = jax.block_until_ready(rbfnet2_forward(x, prep_bf16))
    np.testing.assert_allclose(np.asarray(y3), np.asarray(y_ref),
                               rtol=5e-2, atol=5e-2)

    print("KERNEL_OK")
</pallas_src>

<mosaic_0001>
module attributes {stable_mosaic.version = 11 : i64} {
  func.func @_rbfnet2_kernel(%arg0: i32, %arg1: memref<16x16xf32, #tpu.memory_space<vmem>>, %arg2: memref<16x128xf32, #tpu.memory_space<vmem>>, %arg3: memref<1x128xf32, #tpu.memory_space<vmem>>, %arg4: memref<1x1xf32, #tpu.memory_space<smem>>, %arg5: memref<128x128xf32, #tpu.memory_space<vmem>>, %arg6: memref<1x128xf32, #tpu.memory_space<vmem>>, %arg7: memref<128x128xf32, #tpu.memory_space<vmem>>, %arg8: memref<1x128xf32, #tpu.memory_space<vmem>>, %arg9: memref<1x1xf32, #tpu.memory_space<smem>>, %arg10: memref<128x128xf32, #tpu.memory_space<vmem>>, %arg11: memref<1x1xf32, #tpu.memory_space<vmem>>, %arg12: memref<16x1xf32, #tpu.memory_space<vmem>>) attributes {dimension_semantics = [#tpu.dimension_semantics<parallel>], iteration_bounds = array<i64: 2>, scalar_prefetch = 0 : i64, scratch_operands = 0 : i64, tpu.core_type = #tpu.core_type<tc>, window_params = [{transform_indices = @transform_0, window_bounds = array<i64: 16, 16>}, {pipeline_mode = #tpu.pipeline_mode<synchronous>, transform_indices = @transform_1, window_bounds = array<i64: 16, 128>}, {pipeline_mode = #tpu.pipeline_mode<synchronous>, transform_indices = @transform_2, window_bounds = array<i64: 1, 128>}, {transform_indices = @transform_3, window_bounds = array<i64: 1, 1>}, {pipeline_mode = #tpu.pipeline_mode<synchronous>, transform_indices = @transform_4, window_bounds = array<i64: 128, 128>}, {pipeline_mode = #tpu.pipeline_mode<synchronous>, transform_indices = @transform_5, window_bounds = array<i64: 1, 128>}, {pipeline_mode = #tpu.pipeline_mode<synchronous>, transform_indices = @transform_6, window_bounds = array<i64: 128, 128>}, {pipeline_mode = #tpu.pipeline_mode<synchronous>, transform_indices = @transform_7, window_bounds = array<i64: 1, 128>}, {transform_indices = @transform_8, window_bounds = array<i64: 1, 1>}, {pipeline_mode = #tpu.pipeline_mode<synchronous>, transform_indices = @transform_9, window_bounds = array<i64: 128, 128>}, {pipeline_mode = #tpu.pipeline_mode<synchronous>, transform_indices = @transform_10, window_bounds = array<i64: 1, 1>}, {transform_indices = @transform_11, window_bounds = array<i64: 16, 1>}]} {
    %c0 = arith.constant 0 : index
    %c0_0 = arith.constant 0 : index
    %0 = vector.load %arg1[%c0, %c0_0] : memref<16x16xf32, #tpu.memory_space<vmem>>, vector<16x16xf32>
    %1 = arith.mulf %0, %0 : vector<16x16xf32>
    %cst = arith.constant dense<0.000000e+00> : vector<16xf32>
    %2 = vector.multi_reduction <add>, %1, %cst [1] : vector<16x16xf32> to vector<16xf32>
    %3 = vector.shape_cast %2 : vector<16xf32> to vector<16x1xf32>
    %c0_1 = arith.constant 0 : index
    %c0_2 = arith.constant 0 : index
    %4 = vector.load %arg2[%c0_1, %c0_2] : memref<16x128xf32, #tpu.memory_space<vmem>>, vector<16x128xf32>
    %cst_3 = arith.constant dense<0.000000e+00> : vector<16x128xf32>
    %5 = tpu.matmul %0, %4, %cst_3 {dimension_numbers = #tpu.dot_dimension_numbers<[1], [0], [0], [1], [0, 0, 1, 1], [], []>} : vector<16x16xf32>, vector<16x128xf32>, vector<16x128xf32> -> vector<16x128xf32>
    %6 = vector.broadcast %3 : vector<16x1xf32> to vector<16x128xf32>
    %7 = arith.subf %6, %5 : vector<16x128xf32>
    %c0_4 = arith.constant 0 : index
    %c0_5 = arith.constant 0 : index
    %8 = vector.load %arg3[%c0_4, %c0_5] : memref<1x128xf32, #tpu.memory_space<vmem>>, vector<1x128xf32>
    %9 = vector.broadcast %8 : vector<1x128xf32> to vector<16x128xf32>
    %10 = arith.addf %7, %9 : vector<16x128xf32>
    %cst_6 = arith.constant 0.000000e+00 : f32
    %11 = vector.broadcast %cst_6 : f32 to vector<16x128xf32>
    %12 = arith.maximumf %10, %11 : vector<16x128xf32>
    %c0_7 = arith.constant 0 : index
    %c0_8 = arith.constant 0 : index
    %13 = memref.load %arg4[%c0_7, %c0_8] : memref<1x1xf32, #tpu.memory_space<smem>>
    %cst_9 = arith.constant 0.000000e+00 : f32
    %14 = arith.subf %cst_9, %13 : f32
    %15 = math.sqrt %12 : vector<16x128xf32>
    %16 = vector.broadcast %14 : f32 to vector<16x128xf32>
    %17 = arith.mulf %16, %15 : vector<16x128xf32>
    %18 = math.exp %17 : vector<16x128xf32>
    %c0_10 = arith.constant 0 : index
    %c0_11 = arith.constant 0 : index
    %19 = vector.load %arg5[%c0_10, %c0_11] : memref<128x128xf32, #tpu.memory_space<vmem>>, vector<128x128xf32>
    %cst_12 = arith.constant dense<0.000000e+00> : vector<16x128xf32>
    %20 = tpu.matmul %18, %19, %cst_12 {dimension_numbers = #tpu.dot_dimension_numbers<[1], [0], [0], [1], [0, 0, 1, 1], [], []>} : vector<16x128xf32>, vector<128x128xf32>, vector<16x128xf32> -> vector<16x128xf32>
    %c0_13 = arith.constant 0 : index
    %c0_14 = arith.constant 0 : index
    %21 = vector.load %arg6[%c0_13, %c0_14] : memref<1x128xf32, #tpu.memory_space<vmem>>, vector<1x128xf32>
    %22 = vector.broadcast %21 : vector<1x128xf32> to vector<16x128xf32>
    %23 = arith.addf %20, %22 : vector<16x128xf32>
    %24 = arith.mulf %23, %23 : vector<16x128xf32>
    %cst_15 = arith.constant dense<0.000000e+00> : vector<16xf32>
    %25 = vector.multi_reduction <add>, %24, %cst_15 [1] : vector<16x128xf32> to vector<16xf32>
    %26 = vector.shape_cast %25 : vector<16xf32> to vector<16x1xf32>
    %c0_16 = arith.constant 0 : index
    %c0_17 = arith.constant 0 : index
    %27 = vector.load %arg7[%c0_16, %c0_17] : memref<128x128xf32, #tpu.memory_space<vmem>>, vector<128x128xf32>
    %cst_18 = arith.constant dense<0.000000e+00> : vector<16x128xf32>
    %28 = tpu.matmul %23, %27, %cst_18 {dimension_numbers = #tpu.dot_dimension_numbers<[1], [0], [0], [1], [0, 0, 1, 1], [], []>} : vector<16x128xf32>, vector<128x128xf32>, vector<16x128xf32> -> vector<16x128xf32>
    %29 = vector.broadcast %26 : vector<16x1xf32> to vector<16x128xf32>
    %30 = arith.subf %29, %28 : vector<16x128xf32>
    %c0_19 = arith.constant 0 : index
    %c0_20 = arith.constant 0 : index
    %31 = vector.load %arg8[%c0_19, %c0_20] : memref<1x128xf32, #tpu.memory_space<vmem>>, vector<1x128xf32>
    %32 = vector.broadcast %31 : vector<1x128xf32> to vector<16x128xf32>
    %33 = arith.addf %30, %32 : vector<16x128xf32>
    %cst_21 = arith.constant 0.000000e+00 : f32
    %34 = vector.broadcast %cst_21 : f32 to vector<16x128xf32>
    %35 = arith.maximumf %33, %34 : vector<16x128xf32>
    %c0_22 = arith.constant 0 : index
    %c0_23 = arith.constant 0 : index
    %36 = memref.load %arg9[%c0_22, %c0_23] : memref<1x1xf32, #tpu.memory_space<smem>>
    %cst_24 = arith.constant 0.000000e+00 : f32
    %37 = arith.subf %cst_24, %36 : f32
    %38 = math.sqrt %35 : vector<16x128xf32>
    %39 = vector.broadcast %37 : f32 to vector<16x128xf32>
    %40 = arith.mulf %39, %38 : vector<16x128xf32>
    %41 = math.exp %40 : vector<16x128xf32>
    %c0_25 = arith.constant 0 : index
    %c0_26 = arith.constant 0 : index
    %42 = vector.load %arg10[%c0_25, %c0_26] : memref<128x128xf32, #tpu.memory_space<vmem>>, vector<128x128xf32>
    %cst_27 = arith.constant dense<0.000000e+00> : vector<16x128xf32>
    %43 = tpu.matmul %41, %42, %cst_27 {dimension_numbers = #tpu.dot_dimension_numbers<[1], [0], [0], [1], [0, 0, 1, 1], [], []>} : vector<16x128xf32>, vector<128x128xf32>, vector<16x128xf32> -> vector<16x128xf32>
    %44 = vector.extract_strided_slice %43 {offsets = [0, 0], sizes = [16, 1], strides = [1, 1]} : vector<16x128xf32> to vector<16x1xf32>
    %c0_28 = arith.constant 0 : index
    %c0_29 = arith.constant 0 : index
    %45 = vector.load %arg11[%c0_28, %c0_29] : memref<1x1xf32, #tpu.memory_space<vmem>>, vector<1x1xf32>
    %46 = vector.broadcast %45 : vector<1x1xf32> to vector<16x1xf32>
    %47 = arith.addf %44, %46 : vector<16x1xf32>
    %c0_30 = arith.constant 0 : index
    %c0_31 = arith.constant 0 : index
    %48 = vector.load %arg12[%c0_30, %c0_31] : memref<16x1xf32, #tpu.memory_space<vmem>>, vector<16x1xf32>
    tpu.vector_store %arg12[%c0_30, %c0_31], %47 {strides = array<i32>} : memref<16x1xf32, #tpu.memory_space<vmem>>, vector<16x1xf32>,
    return
  }
  func.func @transform_0(%arg0: i32) -> (i32, i32) {
    %c0_i32 = arith.constant 0 : i32
    %c0_i32_0 = arith.constant 0 : i32
    return %arg0, %c0_i32 : i32, i32
  }
  func.func @transform_1(%arg0: i32) -> (i32, i32) {
    %c0_i32 = arith.constant 0 : i32
    %c0_i32_0 = arith.constant 0 : i32
    %c0_i32_1 = arith.constant 0 : i32
    return %c0_i32, %c0_i32_0 : i32, i32
  }
  func.func @transform_2(%arg0: i32) -> (i32, i32) {
    %c0_i32 = arith.constant 0 : i32
    %c0_i32_0 = arith.constant 0 : i32
    %c0_i32_1 = arith.constant 0 : i32
    return %c0_i32, %c0_i32_0 : i32, i32
  }
  func.func @transform_3(%arg0: i32) -> (i32, i32) {
    %c0_i32 = arith.constant 0 : i32
    %c0_i32_0 = arith.constant 0 : i32
    %c0_i32_1 = arith.constant 0 : i32
    return %c0_i32, %c0_i32_0 : i32, i32
  }
  func.func @transform_4(%arg0: i32) -> (i32, i32) {
    %c0_i32 = arith.constant 0 : i32
    %c0_i32_0 = arith.constant 0 : i32
    %c0_i32_1 = arith.constant 0 : i32
    return %c0_i32, %c0_i32_0 : i32, i32
  }
  func.func @transform_5(%arg0: i32) -> (i32, i32) {
    %c0_i32 = arith.constant 0 : i32
    %c0_i32_0 = arith.constant 0 : i32
    %c0_i32_1 = arith.constant 0 : i32
    return %c0_i32, %c0_i32_0 : i32, i32
  }
  func.func @transform_6(%arg0: i32) -> (i32, i32) {
    %c0_i32 = arith.constant 0 : i32
    %c0_i32_0 = arith.constant 0 : i32
    %c0_i32_1 = arith.constant 0 : i32
    return %c0_i32, %c0_i32_0 : i32, i32
  }
  func.func @transform_7(%arg0: i32) -> (i32, i32) {
    %c0_i32 = arith.constant 0 : i32
    %c0_i32_0 = arith.constant 0 : i32
    %c0_i32_1 = arith.constant 0 : i32
    return %c0_i32, %c0_i32_0 : i32, i32
  }
  func.func @transform_8(%arg0: i32) -> (i32, i32) {
    %c0_i32 = arith.constant 0 : i32
    %c0_i32_0 = arith.constant 0 : i32
    %c0_i32_1 = arith.constant 0 : i32
    return %c0_i32, %c0_i32_0 : i32, i32
  }
  func.func @transform_9(%arg0: i32) -> (i32, i32) {
    %c0_i32 = arith.constant 0 : i32
    %c0_i32_0 = arith.constant 0 : i32
    %c0_i32_1 = arith.constant 0 : i32
    return %c0_i32, %c0_i32_0 : i32, i32
  }
  func.func @transform_10(%arg0: i32) -> (i32, i32) {
    %c0_i32 = arith.constant 0 : i32
    %c0_i32_0 = arith.constant 0 : i32
    %c0_i32_1 = arith.constant 0 : i32
    return %c0_i32, %c0_i32_0 : i32, i32
  }
  func.func @transform_11(%arg0: i32) -> (i32, i32) {
    %c0_i32 = arith.constant 0 : i32
    %c0_i32_0 = arith.constant 0 : i32
    return %arg0, %c0_i32 : i32, i32
  }
}

module attributes {stable_mosaic.version = 11 : i64} {
  func.func @_rbfnet2_kernel(%arg0: i32, %arg1: memref<16x16xf32, #tpu.memory_space<vmem>>, %arg2: memref<16x128xf32, #tpu.memory_space<vmem>>, %arg3: memref<1x128xf32, #tpu.memory_space<vmem>>, %arg4: memref<1x1xf32, #tpu.memory_space<smem>>, %arg5: memref<128x128xf32, #tpu.memory_space<vmem>>, %arg6: memref<1x128xf32, #tpu.memory_space<vmem>>, %arg7: memref<128x128xf32, #tpu.memory_space<vmem>>, %arg8: memref<1x128xf32, #tpu.memory_space<vmem>>, %arg9: memref<1x1xf32, #tpu.memory_space<smem>>, %arg10: memref<128x128xf32, #tpu.memory_space<vmem>>, %arg11: memref<1x1xf32, #tpu.memory_space<vmem>>, %arg12: memref<16x1xf32, #tpu.memory_space<vmem>>) attributes {dimension_semantics = [#tpu.dimension_semantics<parallel>], iteration_bounds = array<i64: 2>, scalar_prefetch = 0 : i64, scratch_operands = 0 : i64, tpu.core_type = #tpu.core_type<tc>, window_params = [{transform_indices = @transform_0, window_bounds = array<i64: 16, 16>}, {pipeline_mode = #tpu.pipeline_mode<synchronous>, transform_indices = @transform_1, window_bounds = array<i64: 16, 128>}, {pipeline_mode = #tpu.pipeline_mode<synchronous>, transform_indices = @transform_2, window_bounds = array<i64: 1, 128>}, {transform_indices = @transform_3, window_bounds = array<i64: 1, 1>}, {pipeline_mode = #tpu.pipeline_mode<synchronous>, transform_indices = @transform_4, window_bounds = array<i64: 128, 128>}, {pipeline_mode = #tpu.pipeline_mode<synchronous>, transform_indices = @transform_5, window_bounds = array<i64: 1, 128>}, {pipeline_mode = #tpu.pipeline_mode<synchronous>, transform_indices = @transform_6, window_bounds = array<i64: 128, 128>}, {pipeline_mode = #tpu.pipeline_mode<synchronous>, transform_indices = @transform_7, window_bounds = array<i64: 1, 128>}, {transform_indices = @transform_8, window_bounds = array<i64: 1, 1>}, {pipeline_mode = #tpu.pipeline_mode<synchronous>, transform_indices = @transform_9, window_bounds = array<i64: 128, 128>}, {pipeline_mode = #tpu.pipeline_mode<synchronous>, transform_indices = @transform_10, window_bounds = array<i64: 1, 1>}, {transform_indices = @transform_11, window_bounds = array<i64: 16, 1>}]} {
    %c0 = arith.constant 0 : index
    %c0_0 = arith.constant 0 : index
    %0 = vector.load %arg1[%c0, %c0_0] : memref<16x16xf32, #tpu.memory_space<vmem>>, vector<16x16xf32>
    %1 = arith.mulf %0, %0 : vector<16x16xf32>
    %cst = arith.constant dense<0.000000e+00> : vector<16xf32>
    %2 = vector.multi_reduction <add>, %1, %cst [1] : vector<16x16xf32> to vector<16xf32>
    %3 = vector.shape_cast %2 : vector<16xf32> to vector<16x1xf32>
    %c0_1 = arith.constant 0 : index
    %c0_2 = arith.constant 0 : index
    %4 = vector.load %arg2[%c0_1, %c0_2] : memref<16x128xf32, #tpu.memory_space<vmem>>, vector<16x128xf32>
    %cst_3 = arith.constant dense<0.000000e+00> : vector<16x128xf32>
    %5 = tpu.matmul %0, %4, %cst_3 {dimension_numbers = #tpu.dot_dimension_numbers<[1], [0], [0], [1], [0, 0, 1, 1], [], []>} : vector<16x16xf32>, vector<16x128xf32>, vector<16x128xf32> -> vector<16x128xf32>
    %6 = vector.broadcast %3 : vector<16x1xf32> to vector<16x128xf32>
    %7 = arith.subf %6, %5 : vector<16x128xf32>
    %c0_4 = arith.constant 0 : index
    %c0_5 = arith.constant 0 : index
    %8 = vector.load %arg3[%c0_4, %c0_5] : memref<1x128xf32, #tpu.memory_space<vmem>>, vector<1x128xf32>
    %9 = vector.broadcast %8 : vector<1x128xf32> to vector<16x128xf32>
    %10 = arith.addf %7, %9 : vector<16x128xf32>
    %cst_6 = arith.constant 0.000000e+00 : f32
    %11 = vector.broadcast %cst_6 : f32 to vector<16x128xf32>
    %12 = arith.maximumf %10, %11 : vector<16x128xf32>
    %c0_7 = arith.constant 0 : index
    %c0_8 = arith.constant 0 : index
    %13 = memref.load %arg4[%c0_7, %c0_8] : memref<1x1xf32, #tpu.memory_space<smem>>
    %cst_9 = arith.constant 0.000000e+00 : f32
    %14 = arith.subf %cst_9, %13 : f32
    %15 = math.sqrt %12 : vector<16x128xf32>
    %16 = vector.broadcast %14 : f32 to vector<16x128xf32>
    %17 = arith.mulf %16, %15 : vector<16x128xf32>
    %18 = math.exp %17 : vector<16x128xf32>
    %c0_10 = arith.constant 0 : index
    %c0_11 = arith.constant 0 : index
    %19 = vector.load %arg5[%c0_10, %c0_11] : memref<128x128xf32, #tpu.memory_space<vmem>>, vector<128x128xf32>
    %cst_12 = arith.constant dense<0.000000e+00> : vector<16x128xf32>
    %20 = tpu.matmul %18, %19, %cst_12 {dimension_numbers = #tpu.dot_dimension_numbers<[1], [0], [0], [1], [0, 0, 1, 1], [], []>} : vector<16x128xf32>, vector<128x128xf32>, vector<16x128xf32> -> vector<16x128xf32>
    %c0_13 = arith.constant 0 : index
    %c0_14 = arith.constant 0 : index
    %21 = vector.load %arg6[%c0_13, %c0_14] : memref<1x128xf32, #tpu.memory_space<vmem>>, vector<1x128xf32>
    %22 = vector.broadcast %21 : vector<1x128xf32> to vector<16x128xf32>
    %23 = arith.addf %20, %22 : vector<16x128xf32>
    %24 = arith.mulf %23, %23 : vector<16x128xf32>
    %cst_15 = arith.constant dense<0.000000e+00> : vector<16xf32>
    %25 = vector.multi_reduction <add>, %24, %cst_15 [1] : vector<16x128xf32> to vector<16xf32>
    %26 = vector.shape_cast %25 : vector<16xf32> to vector<16x1xf32>
    %c0_16 = arith.constant 0 : index
    %c0_17 = arith.constant 0 : index
    %27 = vector.load %arg7[%c0_16, %c0_17] : memref<128x128xf32, #tpu.memory_space<vmem>>, vector<128x128xf32>
    %cst_18 = arith.constant dense<0.000000e+00> : vector<16x128xf32>
    %28 = tpu.matmul %23, %27, %cst_18 {dimension_numbers = #tpu.dot_dimension_numbers<[1], [0], [0], [1], [0, 0, 1, 1], [], []>} : vector<16x128xf32>, vector<128x128xf32>, vector<16x128xf32> -> vector<16x128xf32>
    %29 = vector.broadcast %26 : vector<16x1xf32> to vector<16x128xf32>
    %30 = arith.subf %29, %28 : vector<16x128xf32>
    %c0_19 = arith.constant 0 : index
    %c0_20 = arith.constant 0 : index
    %31 = vector.load %arg8[%c0_19, %c0_20] : memref<1x128xf32, #tpu.memory_space<vmem>>, vector<1x128xf32>
    %32 = vector.broadcast %31 : vector<1x128xf32> to vector<16x128xf32>
    %33 = arith.addf %30, %32 : vector<16x128xf32>
    %cst_21 = arith.constant 0.000000e+00 : f32
    %34 = vector.broadcast %cst_21 : f32 to vector<16x128xf32>
    %35 = arith.maximumf %33, %34 : vector<16x128xf32>
    %c0_22 = arith.constant 0 : index
    %c0_23 = arith.constant 0 : index
    %36 = memref.load %arg9[%c0_22, %c0_23] : memref<1x1xf32, #tpu.memory_space<smem>>
    %cst_24 = arith.constant 0.000000e+00 : f32
    %37 = arith.subf %cst_24, %36 : f32
    %38 = math.sqrt %35 : vector<16x128xf32>
    %39 = vector.broadcast %37 : f32 to vector<16x128xf32>
    %40 = arith.mulf %39, %38 : vector<16x128xf32>
    %41 = math.exp %40 : vector<16x128xf32>
    %c0_25 = arith.constant 0 : index
    %c0_26 = arith.constant 0 : index
    %42 = vector.load %arg10[%c0_25, %c0_26] : memref<128x128xf32, #tpu.memory_space<vmem>>, vector<128x128xf32>
    %cst_27 = arith.constant dense<0.000000e+00> : vector<16x128xf32>
    %43 = tpu.matmul %41, %42, %cst_27 {dimension_numbers = #tpu.dot_dimension_numbers<[1], [0], [0], [1], [0, 0, 1, 1], [], []>} : vector<16x128xf32>, vector<128x128xf32>, vector<16x128xf32> -> vector<16x128xf32>
    %44 = vector.extract_strided_slice %43 {offsets = [0, 0], sizes = [16, 1], strides = [1, 1]} : vector<16x128xf32> to vector<16x1xf32>
    %c0_28 = arith.constant 0 : index
    %c0_29 = arith.constant 0 : index
    %45 = vector.load %arg11[%c0_28, %c0_29] : memref<1x1xf32, #tpu.memory_space<vmem>>, vector<1x1xf32>
    %46 = vector.broadcast %45 : vector<1x1xf32> to vector<16x1xf32>
    %47 = arith.addf %44, %46 : vector<16x1xf32>
    %c0_30 = arith.constant 0 : index
    %c0_31 = arith.constant 0 : index
    %48 = vector.load %arg12[%c0_30, %c0_31] : memref<16x1xf32, #tpu.memory_space<vmem>>, vector<16x1xf32>
    tpu.vector_store %arg12[%c0_30, %c0_31], %47 {strides = array<i32>} : memref<16x1xf32, #tpu.memory_space<vmem>>, vector<16x1xf32>,
    return
  }
  func.func @transform_0(%arg0: i32) -> (i32, i32) {
    %c0_i32 = arith.constant 0 : i32
    %c0_i32_0 = arith.constant 0 : i32
    return %arg0, %c0_i32 : i32, i32
  }
  func.func @transform_1(%arg0: i32) -> (i32, i32) {
    %c0_i32 = arith.constant 0 : i32
    %c0_i32_0 = arith.constant 0 : i32
    %c0_i32_1 = arith.constant 0 : i32
    return %c0_i32, %c0_i32_0 : i32, i32
  }
  func.func @transform_2(%arg0: i32) -> (i32, i32) {
    %c0_i32 = arith.constant 0 : i32
    %c0_i32_0 = arith.constant 0 : i32
    %c0_i32_1 = arith.constant 0 : i32
    return %c0_i32, %c0_i32_0 : i32, i32
  }
  func.func @transform_3(%arg0: i32) -> (i32, i32) {
    %c0_i32 = arith.constant 0 : i32
    %c0_i32_0 = arith.constant 0 : i32
    %c0_i32_1 = arith.constant 0 : i32
    return %c0_i32, %c0_i32_0 : i32, i32
  }
  func.func @transform_4(%arg0: i32) -> (i32, i32) {
    %c0_i32 = arith.constant 0 : i32
    %c0_i32_0 = arith.constant 0 : i32
    %c0_i32_1 = arith.constant 0 : i32
    return %c0_i32, %c0_i32_0 : i32, i32
  }
  func.func @transform_5(%arg0: i32) -> (i32, i32) {
    %c0_i32 = arith.constant 0 : i32
    %c0_i32_0 = arith.constant 0 : i32
    %c0_i32_1 = arith.constant 0 : i32
    return %c0_i32, %c0_i32_0 : i32, i32
  }
  func.func @transform_6(%arg0: i32) -> (i32, i32) {
    %c0_i32 = arith.constant 0 : i32
    %c0_i32_0 = arith.constant 0 : i32
    %c0_i32_1 = arith.constant 0 : i32
    return %c0_i32, %c0_i32_0 : i32, i32
  }
  func.func @transform_7(%arg0: i32) -> (i32, i32) {
    %c0_i32 = arith.constant 0 : i32
    %c0_i32_0 = arith.constant 0 : i32
    %c0_i32_1 = arith.constant 0 : i32
    return %c0_i32, %c0_i32_0 : i32, i32
  }
  func.func @transform_8(%arg0: i32) -> (i32, i32) {
    %c0_i32 = arith.constant 0 : i32
    %c0_i32_0 = arith.constant 0 : i32
    %c0_i32_1 = arith.constant 0 : i32
    return %c0_i32, %c0_i32_0 : i32, i32
  }
  func.func @transform_9(%arg0: i32) -> (i32, i32) {
    %c0_i32 = arith.constant 0 : i32
    %c0_i32_0 = arith.constant 0 : i32
    %c0_i32_1 = arith.constant 0 : i32
    return %c0_i32, %c0_i32_0 : i32, i32
  }
  func.func @transform_10(%arg0: i32) -> (i32, i32) {
    %c0_i32 = arith.constant 0 : i32
    %c0_i32_0 = arith.constant 0 : i32
    %c0_i32_1 = arith.constant 0 : i32
    return %c0_i32, %c0_i32_0 : i32, i32
  }
  func.func @transform_11(%arg0: i32) -> (i32, i32) {
    %c0_i32 = arith.constant 0 : i32
    %c0_i32_0 = arith.constant 0 : i32
    return %arg0, %c0_i32 : i32, i32
  }
}

</mosaic_0001>

<bundles_post_ra>
// kernel: tpu_custom_call.1
= control target key start
LH: loop header
LB: loop body
LE: loop exit
PB: predicated region body
PF: predicated region fallthrough
CT: control target
= control target key end

     0   :  { %s2077_s0 = inlined_call_operand.vmem [shape: f32[20,16], index: 0, kind: input, shape index: {}]   ;;  %s2078_s1 = inlined_call_operand.vmem [shape: f32[16,128], index: 1, kind: input, shape index: {}]   ;;  %s2079_s2 = inlined_call_operand.vmem [shape: f32[1,128], index: 2, kind: input, shape index: {}]   ;;  %s2080_s3 = inlined_call_operand.<no memory space> [shape: f32[1,1], index: 3, kind: input, shape index: {}]   ;;  %s2081_s4 = inlined_call_operand.hbm [shape: f32[128,128], index: 4, kind: input, shape index: {}]   ;;  %s2082_s5 = inlined_call_operand.vmem [shape: f32[1,128], index: 5, kind: input, shape index: {}]   ;;  %s2083_s6 = inlined_call_operand.hbm [shape: f32[128,128], index: 6, kind: input, shape index: {}]   ;;  %s2084_s7 = inlined_call_operand.vmem [shape: f32[1,128], index: 7, kind: input, shape index: {}]   ;;  %s2085_s8 = inlined_call_operand.<no memory space> [shape: f32[1,1], index: 8, kind: input, shape index: {}]   ;;  %s2086_s9 = inlined_call_operand.hbm [shape: f32[128,128], index: 9, kind: input, shape index: {}]   ;;  %s2087_s10 = inlined_call_operand.<no memory space> [shape: f32[1,1], index: 10, kind: input, shape index: {}]   ;;  %s2088_s11 = inlined_call_operand.vmem [shape: f32[20,1], index: 11, kind: output, shape index: {}]  }
   0x1   :  { %16 = sst [smem:[#allocation2]] %s2080_s3  ;;  %v18_v0 = vstv %s2087_s10 }
   0x2   :  { %17 = sst [smem:[#allocation3]] %s2085_s8  ;;  %19 = vst [vmem:[#allocation4] sm:$0x1] %v18_v0 }
   0x3   :  { %20 = vsyncpa [#allocation6], 0 }
   0x4   :  { %21 = vsyncpa [#allocation8], 0  ;;  %s1870_s23 = smov 0   ;;  %s1872_s24 = smov 0  }
   0x5   :  { %s1874_s25 = smov 0  }
   0x6 LB: > { %s1883_s3 = sadd.s32 4294967295, %s1762_s25   ;;  %s1885_s8 = sadd.s32 1, %s1762_s25   ;;  %s1762_s25 = sphi %s1874_s25, %s2105_s25   ;;  %s1758_s24 = sphi %s1872_s24, %s2104_s24   ;;  %s1754_s23 = sphi %s1870_s23, %s2103_s23  }
   0x7   : > { %s267_s10 = ssub.s32 %s1762_s25, %s1885_s8  ;;  %s270_s26 = sadd.s32 1, %s1758_s24 }
   0x8   : > { %p268_p0 = scmp.eq.s32.totalorder %s267_s10, 0  ;;  %p280_p1 = scmp.ne.s32.totalorder %s1758_s24, %s1754_s23 }
   0x9   : > { %p281_p2 = scmp.eq.s32.totalorder %s1883_s3, 1  ;;  %p1171_p3 = scmp.ge.s32.totalorder %s1762_s25, 1 }
   0xa   : > { %s1893_s27 = scalar_select %p268_p0, %s1758_s24, %s270_s26  }
   0xb   : > { %p1895_p4 = por %p281_p2, %p280_p1  ;;  %p294_p5 = scmp.lt.s32.totalorder %s1762_s25, 3 }
   0xc   : > { %2091 = sst [smem:[#allocation13_spill]] %s1893_s27  ;;  %p2089_p6 = scmp.eq.s32.totalorder %s1883_s3, 0 }
   0xd   : > { %s2092_s28 = scalar_select %p1895_p4, 1, 0 }
   0xe   : > { %p1900_p7 = pnand %p1171_p3, %p294_p5  ;;  %s1796_s30 = smov [#allocation7]  }
   0xf   : > { %s331_s12 = sshll.u32 %s1796_s30, 4  ;;  %s1797_s14 = smov [#allocation5]   ;;  %s1906_s12 = int_to_ptr.vmem [resolvable:$true] %s331_s12 }
  0x10   : > { %s2093_s29 = scalar_select %p1900_p7, 1, 0 }
  0x11   : > { %p1491_p8 = pneg %p1900_p7  ;;  %s315_s15 = sshll.u32 %s1797_s14, 4  ;;  %s1914_s15 = int_to_ptr.vmem [resolvable:$true] %s315_s15 }
  0x12   : > { %s1798_s16 = smov [#allocation9]   ;;  %s1616_s20 = scalar_lea.hbm %s2083_s6, 2048 }
  0x13   : > { %p1910_p9 = pnand %p2089_p6, %p1491_p8  ;;  %s1916_s17 = sshll.u32 %s1798_s16, 4  ;;  %s351_s17 = int_to_ptr.vmem [resolvable:$true] %s1916_s17 }
  0x14   : > { %p1617_p10 = scmp.ne.s32.totalorder %s2083_s6, %s1616_s20  ;;  %p1623_p0 = scmp.lt.u32.totalorder %s1616_s20, %s2083_s6 }
  0x15   : > { %p1926_p11 = pneg %p1910_p9 }
  0x17   : > { %p1619_p12 = pnand %p1926_p11, %p1617_p10 }
  0x19   : > { %p1620_p13 = pneg %p1619_p12 }
  0x1b   : > { %p1625_p1 = pnand %p1623_p0, %p1620_p13 }
  0x1d   : > { %1628 = shalt.err (!%p1625_p1)
}
  0x1e   : > { %s1629_s30 = scalar_lea.vmem %s1906_s12, 2048  ;;  %p1637_p8 = scmp.lt.s32.totalorder %s1906_s12, %s1906_s12 }
  0x1f   : > { %p1630_p2 = scmp.ne.s32.totalorder %s1906_s12, %s1629_s30  ;;  %p1638_p6 = scmp.lt.s32.totalorder %s1629_s30, %s1629_s30 }
  0x21   : > { %p1632_p3 = pnand %p1630_p2, %p1926_p11  ;;  %p1639_p10 = por %p1638_p6, %p1637_p8 }
  0x23   : > { %p1633_p5 = pneg %p1632_p3 }
  0x25   : > { %p1640_p12 = pnand %p1639_p10, %p1633_p5 }
  0x27   : > { %1643 = shalt.err (!%p1640_p12)
}
  0x28   : > { %s1799_s14 = smov 128   ;;  %s1800_s16 = smov 8  }
  0x29   : > { %1497 = dma.hbm_to_vmem [thread:$0]  (!%p1910_p9), %s2083_s6, 2048, %s1906_s12, [#allocation8], %s1799_s14, %s1799_s14, %s1800_s16  }
  0x2a   : > { %s1644_s22 = scalar_lea.hbm %s2081_s4, 2048 }
  0x2b   : > { %p1645_p6 = scmp.ne.s32.totalorder %s2081_s4, %s1644_s22  ;;  %p1651_p1 = scmp.lt.u32.totalorder %s1644_s22, %s2081_s4 }
  0x2d   : > { %p1647_p13 = pnand %p1645_p6, %p1926_p11 }
  0x2f   : > { %p1648_p0 = pneg %p1647_p13 }
  0x31   : > { %p1653_p2 = pnand %p1651_p1, %p1648_p0 }
  0x33   : > { %1656 = shalt.err (!%p1653_p2)
}
  0x34   : > { %s1657_s12 = scalar_lea.vmem %s1914_s15, 2048  ;;  %p1665_p10 = scmp.lt.s32.totalorder %s1914_s15, %s1914_s15 }
  0x35   : > { %p1658_p3 = scmp.ne.s32.totalorder %s1914_s15, %s1657_s12  ;;  %p1666_p12 = scmp.lt.s32.totalorder %s1657_s12, %s1657_s12 }
  0x37   : > { %p1660_p5 = pnand %p1658_p3, %p1926_p11  ;;  %p1667_p6 = por %p1666_p12, %p1665_p10 }
  0x39   : > { %p1661_p8 = pneg %p1660_p5 }
  0x3b   : > { %p1668_p13 = pnand %p1667_p6, %p1661_p8 }
  0x3d   : > { %1671 = shalt.err (!%p1668_p13)
}
  0x3e   : > { %1494 = dma.hbm_to_vmem [thread:$0]  (!%p1910_p9), %s2081_s4, 2048, %s1914_s15, [#allocation6], %s1799_s14, %s1799_s14, %s1800_s16  }
  0x3f   : > { %s1672_s21 = scalar_lea.hbm %s2086_s9, 2048 }
  0x40   : > { %p1673_p0 = scmp.ne.s32.totalorder %s2086_s9, %s1672_s21  ;;  %p1679_p3 = scmp.lt.u32.totalorder %s1672_s21, %s2086_s9 }
  0x42   : > { %p1675_p1 = pnand %p1673_p0, %p1926_p11 }
  0x44   : > { %p1676_p2 = pneg %p1675_p1 }
  0x46   : > { %p1681_p5 = pnand %p1679_p3, %p1676_p2 }
  0x48   : > { %1684 = shalt.err (!%p1681_p5)
}
  0x49   : > { %s1685_s12 = scalar_lea.vmem %s351_s17, 2048  ;;  %p1693_p6 = scmp.lt.s32.totalorder %s351_s17, %s351_s17 }
  0x4a   : > { %p1686_p8 = scmp.ne.s32.totalorder %s351_s17, %s1685_s12  ;;  %p1694_p13 = scmp.lt.s32.totalorder %s1685_s12, %s1685_s12 }
  0x4c   : > { %p1688_p10 = pnand %p1686_p8, %p1926_p11  ;;  %p1695_p4 = por %p1694_p13, %p1693_p6 }
  0x4e   : > { %p1689_p12 = pneg %p1688_p10 }
  0x50   : > { %p1696_p7 = pnand %p1695_p4, %p1689_p12 }
  0x52   : > { %1699 = shalt.err (!%p1696_p7)
}
  0x53   : > { %1500 = dma.hbm_to_vmem [thread:$0]  (!%p1910_p9), %s2086_s9, 2048, %s351_s17, [#allocation8], %s1799_s14, %s1799_s14, %s1800_s16  }
  0x54   : > { %p2096_p0 = scmp.ne.s32.totalorder %s2093_s29, 0 }
  0x55   : > { %p2097_p11 = scmp.eq.s32.totalorder (!%p2096_p0), %s1883_s3, 0 }
  0x56   : > { %386 = sbr.rel (%p2096_p0) target bundleno = 1088 (0x440), region = 64 }
  0x5d   : > { %1745 = dma.done.wait (%p2097_p11), [#allocation6], 2048   ;;  %p2098_p1 = pmov %p2097_p11 }
  0x5f   : > { %1747 = vsyncadd (%p2098_p1), [#allocation6], 4294965248  ;;  %p2099_p4 = pmov %p2098_p1 }
  0x60   : > { %p2100_p7 = pmov %p2098_p1 }
  0x61   : > { %1749 = dma.done.wait (%p2099_p4), [#allocation8], 4096  }
  0x62   : > { %1751 = vsyncadd (%p2100_p7), [#allocation8], 4294963200  ;;  %s2009_s13 = sshll.u32 %s1883_s3, 1  ;;  %vm460_vm0 = vcmask 130048   ;;  %v467_v1 = vld [vmem:[%s2078_s1] sm:$0xff]  ;;  %v468_v2 = vld [vmem:[%s2078_s1 + $0x8] sm:$0xff] }
  0x63   : > { %p442_p9 = scmp.lt.s32.totalorder %s2009_s13, 2  ;;  %v1379_v4 = vpack.c.bf16 %v468_v2, %v467_v1  ;;  %v586_v10 = vld [vmem:[#allocation5] sm:$0xff]  ;;  %v587_v11 = vld [vmem:[#allocation5 + $0x8] sm:$0xff]  ;;  %v588_v13 = vld [vmem:[#allocation5 + $0x10] sm:$0xff]  ;;  %s563_s26 = sld [smem:[#allocation2]]  ;;  %vm917_vm9 = vcmask 7168  }
  0x64   : > { %v1383_v12 = vpack.c.bf16 %v587_v11, %v586_v10  ;;  %v589_v14 = vld [vmem:[#allocation5 + $0x18] sm:$0xff]  ;;  %v590_v15 = vld [vmem:[#allocation5 + $0x20] sm:$0xff]  ;;  %v591_v17 = vld [vmem:[#allocation5 + $0x28] sm:$0xff]  ;;  %s434_s14 = sand.u32 1, %s1754_s23   ;;  %p2101_p2 = scmp.ne.s32.totalorder %s2092_s28, 0 }
  0x65   : > { %s443_s29 = scalar_select %p442_p9, %s2009_s13, 2  ;;  %1380 = vmatprep.subr.bf16.mxu0 %v1379_v4  ;;  %v1387_v16 = vpack.c.bf16 %v589_v14, %v588_v13  ;;  %v1391_v18 = vpack.c.bf16 %v591_v17, %v590_v15  ;;  %v592_v19 = vld [vmem:[#allocation5 + $0x30] sm:$0xff]  ;;  %v593_v20 = vld [vmem:[#allocation5 + $0x38] sm:$0xff]  ;;  %v594_v22 = vld [vmem:[#allocation5 + $0x40] sm:$0xff] }
  0x66   : > { %1382 = vmatpush3.bf16.msra.mxu0 %v1379_v4  ;;  %1384 = vmatprep.subr.bf16.mxu1 %v1383_v12  ;;  %v1395_v21 = vpack.c.bf16 %v593_v20, %v592_v19  ;;  %v595_v23 = vld [vmem:[#allocation5 + $0x48] sm:$0xff]  ;;  %v596_v25 = vld [vmem:[#allocation5 + $0x50] sm:$0xff]  ;;  %v597_v26 = vld [vmem:[#allocation5 + $0x58] sm:$0xff]  ;;  %s928_s19 = ssub.s32 (%p2101_p2), 3, %s2009_s13  ;;  %s1206_s23 = sshll.u32 (%p2101_p2), %s1883_s3, 4 }
  0x67   : > { %s1182_s17 = sshll.u32 %s443_s29, 3  ;;  %1386 = vmatpush3.bf16.msra.mxu1 %v1383_v12  ;;  %v1399_v24 = vpack.c.bf16 %v595_v23, %v594_v22  ;;  %v1403_v27 = vpack.c.bf16 %v597_v26, %v596_v25  ;;  %v598_v28 = vld [vmem:[#allocation5 + $0x60] sm:$0xff]  ;;  %v599_v29 = vld [vmem:[#allocation5 + $0x68] sm:$0xff]  ;;  %v600_v31 = vld [vmem:[#allocation5 + $0x70] sm:$0xff]  ;;  %p929_p3 = scmp.lt.s32.totalorder (%p2101_p2), %s928_s19, 2 }
  0x68   : > { %s445_s16 = scalar_lea.vmem %s2077_s0, %s1182_s17  ;;  %1388 = vmatprep.subr.bf16.mxu1 %v1387_v16  ;;  %v1407_v30 = vpack.c.bf16 %v599_v29, %v598_v28  ;;  %v601_v32 = vld [vmem:[#allocation5 + $0x78] sm:$0xff]  ;;  %v690_v34 = vld [vmem:[#allocation7] sm:$0xff]  ;;  %v691_v35 = vld [vmem:[#allocation7 + $0x8] sm:$0xff]  ;;  %s794_s17 = sld [smem:[#allocation3]] }
  0x69   : > { %v456_v3 = vld [vmem:[%s445_s16] sm:$0xff]  ;;  %v457_v5 = vld [vmem:[%s445_s16 + $0x8] sm:$0xff]  ;;  %v1411_v33 = vpack.c.bf16 %v601_v32, %v600_v31  ;;  %v692_v36 = vld [vmem:[#allocation7 + $0x10] sm:$0xff]  ;;  %v1415_v37 = vpack.c.bf16 %v691_v35, %v690_v34  ;;  %s564_s30 = ssub.f32 0.0, %s563_s26  ;;  %s1180_s16 = sshll.u32 %s434_s14, 4 }
  0x6a   : > { %v458_v6 = vmul.f32 %v456_v3, %v456_v3  ;;  %1271 = vmatprep.mubr.msk.f32.mxu0 %vm460_vm0, %v456_v3  ;;  %v459_v7 = vmul.f32 %v457_v5, %v457_v5  ;;  %v693_v38 = vld [vmem:[#allocation7 + $0x18] sm:$0xff]  ;;  %v694_v40 = vld [vmem:[#allocation7 + $0x20] sm:$0xff]  ;;  %v695_v41 = vld [vmem:[#allocation7 + $0x28] sm:$0xff]  ;;  %s2032_s18 = scalar_lea.vmem [#allocation10], %s1180_s16   ;;  %s2043_s22 = scalar_lea.vmem (%p2101_p2), %s2088_s11, %s1206_s23  }
  0x6b   : > { %1272 = vmatmul.mubr.msk.f32.vlgmr.msra.gmra.mrb[0].mxu0 %vm460_vm0, %v457_v5  ;;  %1390 = vmatpush3.bf16.msra.mxu1 %v1387_v16  ;;  %v1419_v39 = vpack.c.bf16 %v693_v38, %v692_v36  ;;  %v1423_v42 = vpack.c.bf16 %v695_v41, %v694_v40  ;;  %v696_v43 = vld [vmem:[#allocation7 + $0x30] sm:$0xff]  ;;  %v697_v44 = vld [vmem:[#allocation7 + $0x38] sm:$0xff]  ;;  %v698_v46 = vld [vmem:[#allocation7 + $0x40] sm:$0xff] }
  0x6c   : > { %v461_v8 = vsel %vm460_vm0, %v458_v6, 0.0  ;;  %v464_v9 = vsel %vm460_vm0, %v459_v7, 0.0  ;;  %1392 = vmatprep.subr.bf16.mxu1 %v1391_v18  ;;  %1416 = vmatprep.subr.bf16.mxu0 %v1415_v37  ;;  %v1427_v45 = vpack.c.bf16 %v697_v44, %v696_v43  ;;  %v699_v47 = vld [vmem:[#allocation7 + $0x48] sm:$0xff]  ;;  %v700_v49 = vld [vmem:[#allocation7 + $0x50] sm:$0xff]  ;;  %v701_v50 = vld [vmem:[#allocation7 + $0x58] sm:$0xff]  ;;  %v579_v7 = vstv %s564_s30 }
  0x6d   : > { %462 = vadd.xlane.f32.xlu0 %v461_v8  ;;  %1418 = vmatpush3.bf16.msra.mxu0 %v1415_v37  ;;  %v1431_v48 = vpack.c.bf16 %v699_v47, %v698_v46  ;;  %v1435_v51 = vpack.c.bf16 %v701_v50, %v700_v49  ;;  %v702_v52 = vld [vmem:[#allocation7 + $0x60] sm:$0xff]  ;;  %v703_v53 = vld [vmem:[#allocation7 + $0x68] sm:$0xff]  ;;  %v1185_v58 = vld [vmem:[%s2079_s2] ss:$0 sm:$0xff] }
  0x6e   : > { %1420 = vmatprep.subr.bf16.mxu0 %v1419_v39  ;;  %v1439_v54 = vpack.c.bf16 %v703_v53, %v702_v52  ;;  %v704_v19 = vld [vmem:[#allocation7 + $0x70] sm:$0xff]  ;;  %v705_v20 = vld [vmem:[#allocation7 + $0x78] sm:$0xff]  ;;  %v817_v29 = vld [vmem:[#allocation9] sm:$0xff]  ;;  %s795_s25 = ssub.f32 0.0, %s794_s17 }
  0x6f   : > { %1394 = vmatpush3.bf16.msra.mxu1 %v1391_v18  ;;  %v1186_v22 = vld [vmem:[%s2082_s5] ss:$0 sm:$0xff]  ;;  %v819_v32 = vld [vmem:[#allocation9 + $0x10] sm:$0xff]  ;;  %v821_v35 = vld [vmem:[#allocation9 + $0x20] sm:$0xff] }
  0x70   : > { %1396 = vmatprep.subr.bf16.mxu1 %v1395_v21  ;;  %v822_v36 = vld [vmem:[#allocation9 + $0x28] sm:$0xff]  ;;  %v823_v38 = vld [vmem:[#allocation9 + $0x30] sm:$0xff]  ;;  %v825_v41 = vld [vmem:[#allocation9 + $0x40] sm:$0xff] }
  0x71   : > { %465 = vadd.xlane.f32.xlu0 %v464_v9  ;;  %1422 = vmatpush3.bf16.msra.mxu0 %v1419_v39  ;;  %v1455_v37 = vpack.c.bf16 %v822_v36, %v821_v35  ;;  %v824_v39 = vld [vmem:[#allocation9 + $0x38] sm:$0xff]  ;;  %v827_v44 = vld [vmem:[#allocation9 + $0x50] sm:$0xff]  ;;  %v829_v47 = vld [vmem:[#allocation9 + $0x60] sm:$0xff] }
  0x72   : > { %1424 = vmatprep.subr.bf16.mxu0 %v1423_v42  ;;  %v1459_v40 = vpack.c.bf16 %v824_v39, %v823_v38  ;;  %v831_v49 = vld [vmem:[#allocation9 + $0x70] sm:$0xff] }
  0x73   : > { %1398 = vmatpush3.bf16.msra.mxu1 %v1395_v21  ;;  %v1443_v21 = vpack.c.bf16 %v705_v20, %v704_v19 }
  0x74   : > { %1400 = vmatprep.subr.bf16.mxu1 %v1399_v24 }
  0x75   : > { %1426 = vmatpush3.bf16.msra.mxu0 %v1423_v42  ;;  %v826_v42 = vld [vmem:[#allocation9 + $0x48] sm:$0xff] }
  0x76   : > { %1428 = vmatprep.subr.bf16.mxu0 %v1427_v45  ;;  %v1463_v43 = vpack.c.bf16 %v826_v42, %v825_v41 }
  0x77   : > { %1402 = vmatpush3.bf16.msra.mxu1 %v1399_v24 }
  0x78   : > { %1404 = vmatprep.subr.bf16.mxu1 %v1403_v27 }
  0x79   : > { %1430 = vmatpush3.bf16.msra.mxu0 %v1427_v45  ;;  %v828_v45 = vld [vmem:[#allocation9 + $0x58] sm:$0xff] }
  0x7a   : > { %1432 = vmatprep.subr.bf16.mxu0 %v1431_v48  ;;  %v1467_v46 = vpack.c.bf16 %v828_v45, %v827_v44 }
  0x7b   : > { %1406 = vmatpush3.bf16.msra.mxu1 %v1403_v27 }
  0x7c   : > { %1408 = vmatprep.subr.bf16.mxu1 %v1407_v30 }
  0x7d   : > { %1434 = vmatpush3.bf16.msra.mxu0 %v1431_v48  ;;  %v830_v48 = vld [vmem:[#allocation9 + $0x68] sm:$0xff] }
  0x7e   : > { %1436 = vmatprep.subr.bf16.mxu0 %v1435_v51  ;;  %v1471_v50 = vpack.c.bf16 %v830_v48, %v829_v47 }
  0x7f   : > { %1410 = vmatpush3.bf16.msra.mxu1 %v1407_v30  ;;  %v818_v30 = vld [vmem:[#allocation9 + $0x8] sm:$0xff] }
  0x80   : > { %1412 = vmatprep.subr.bf16.mxu1 %v1411_v33  ;;  %v1447_v31 = vpack.c.bf16 %v818_v30, %v817_v29 }
  0x81   : > { %1438 = vmatpush3.bf16.msra.mxu0 %v1435_v51  ;;  %v832_v51 = vld [vmem:[#allocation9 + $0x78] sm:$0xff] }
  0x82   : > { %1440 = vmatprep.subr.bf16.mxu0 %v1439_v54  ;;  %v1475_v52 = vpack.c.bf16 %v832_v51, %v831_v49 }
  0x83   : > { %1414 = vmatpush3.bf16.msra.mxu1 %v1411_v33  ;;  %v820_v33 = vld [vmem:[#allocation9 + $0x18] sm:$0xff] }
  0x84   : > { %1448 = vmatprep.subr.bf16.mxu1 %v1447_v31  ;;  %v1451_v34 = vpack.c.bf16 %v820_v33, %v819_v32 }
  0x85   : > { %1442 = vmatpush3.bf16.msra.mxu0 %v1439_v54 }
  0x86   : > { %1444 = vmatprep.subr.bf16.mxu0 %v1443_v21 }
  0x89   : > { %1446 = vmatpush3.bf16.msra.mxu0 %v1443_v21 }
  0xfa   : > { %v463_v55 = vpop.xlane.xlu0 %462 }
  0xfe   : > { %v466_v56 = vpop.xlane.xlu0 %465 }
 0x13e   : > { %v1273_v57 = vpop.f32.mrb[0].mxu0 }
 0x13f   : > { %v551_v59 = vsub.f32 %v466_v56, %v1273_v57  ;;  %v541_v60 = vpop.f32.mrb[1].mxu0  ;;  %v1187_v56 = vld [vmem:[%s2084_s7] ss:$0 sm:$0xff] }
 0x140   : > { %v550_v61 = vsub.f32 %v463_v55, %v541_v60 }
 0x141   : > { %v560_v62 = vadd.f32 %v1185_v58, %v551_v59 }
 0x142   : > { %v559_v63 = vadd.f32 %v1185_v58, %v550_v61 }
 0x143   : > { %v562_v0 = vmax.f32 %v560_v62, 0.0 }
 0x144   : > { %v561_v1 = vmax.f32 %v559_v63, 0.0 }
 0x145   : > { %1600 = vrsqrt.f32 %v562_v0  ;;  %vm574_vm1 = vcmp.eq.f32.partialorder %v562_v0, inf  ;;  %v577_v6 = vand.u32 2147483648, %v562_v0  ;;  %vm576_vm3 = vcmp.eq.f32.partialorder %v562_v0, 0.0 }
 0x146   : > { %1602 = vrsqrt.f32 %v561_v1  ;;  %vm567_vm2 = vcmp.eq.f32.partialorder %v561_v1, inf  ;;  %v570_v8 = vand.u32 2147483648, %v561_v1  ;;  %vm569_vm4 = vcmp.eq.f32.partialorder %v561_v1, 0.0 }
 0x14f   : > { %v1601_v2 = vpop.eup %1600 }
 0x150   : > { %v1603_v3 = vpop.eup %1602  ;;  %v573_v4 = vmul.f32 %v1601_v2, %v562_v0 }
 0x151   : > { %v566_v5 = vmul.f32 %v1603_v3, %v561_v1 }
 0x152   : > { %v575_v9 = vsel %vm574_vm1, %v562_v0, %v573_v4  ;;  %v810_v4 = vstv %s795_s25 }
 0x153   : > { %v568_v10 = vsel %vm567_vm2, %v561_v1, %v566_v5  ;;  %v578_v11 = vsel %vm576_vm3, %v577_v6, %v575_v9 }
 0x154   : > { %v571_v12 = vsel %vm569_vm4, %v570_v8, %v568_v10  ;;  %v581_v13 = vmul.f32 %v579_v7, %v578_v11 }
 0x155   : > { %v580_v14 = vmul.f32 %v579_v7, %v571_v12 }
 0x156   : > { %v584_v15 = vmul.f32 1.442695, %v581_v13 }
 0x157   : > { %v582_v16 = vmul.f32 1.442695, %v580_v14 }
 0x159   : > { %1604 = vpow2.f32 %v582_v16 }
 0x15a   : > { %1606 = vpow2.f32 %v584_v15 }
 0x163   : > { %v1605_v17 = vpop.eup %1604 }
 0x164   : > { %v1607_v18 = vpop.eup %1606  ;;  %1306 = vmatprep.mubr.f32.mxu1 %v1605_v17  ;;  %v1188_v17 = vld [vmem:[#allocation4] ss:$0 sm:$0xff] }
 0x165   : > { %1307 = vmatmul.mubr.f32.vlgmr.msra.gmra.mrb[0].mxu1 %v1607_v18 }
 0x166   : > { %1450 = vmatpush3.bf16.msra.mxu1 %v1447_v31 }
 0x167   : > { %1452 = vmatprep.subr.bf16.mxu1 %v1451_v34 }
 0x16a   : > { %1454 = vmatpush3.bf16.msra.mxu1 %v1451_v34 }
 0x16b   : > { %1456 = vmatprep.subr.bf16.mxu1 %v1455_v37 }
 0x16e   : > { %1458 = vmatpush3.bf16.msra.mxu1 %v1455_v37 }
 0x16f   : > { %1460 = vmatprep.subr.bf16.mxu1 %v1459_v40 }
 0x172   : > { %1462 = vmatpush3.bf16.msra.mxu1 %v1459_v40 }
 0x173   : > { %1464 = vmatprep.subr.bf16.mxu1 %v1463_v43 }
 0x176   : > { %1466 = vmatpush3.bf16.msra.mxu1 %v1463_v43 }
 0x177   : > { %1468 = vmatprep.subr.bf16.mxu1 %v1467_v46 }
 0x17a   : > { %1470 = vmatpush3.bf16.msra.mxu1 %v1467_v46 }
 0x17b   : > { %1472 = vmatprep.subr.bf16.mxu1 %v1471_v50 }
 0x17e   : > { %1474 = vmatpush3.bf16.msra.mxu1 %v1471_v50 }
 0x17f   : > { %1476 = vmatprep.subr.bf16.mxu1 %v1475_v52 }
 0x182   : > { %1478 = vmatpush3.bf16.msra.mxu1 %v1475_v52 }
 0x238   : > { %v1308_v23 = vpop.f32.mrb[0].mxu1 }
 0x239   : > { %v675_v24 = vpop.f32.mrb[1].mxu1  ;;  %v681_v26 = vadd.f32 %v1308_v23, %v1186_v22 }
 0x23a   : > { %v676_v25 = vadd.f32 %v1186_v22, %v675_v24 }
 0x23b   : > { %v685_v28 = vmul.f32 %v681_v26, %v681_v26 }
 0x23c   : > { %1341 = vmatprep.mubr.f32.mxu0 %v676_v25  ;;  %v684_v27 = vmul.f32 %v676_v25, %v676_v25 }
 0x23d   : > { %1342 = vmatmul.mubr.f32.vlgmr.msra.gmra.mrb[2].mxu0 %v681_v26 }
 0x23e   : > { %686 = vadd.xlane.f32.xlu1 %v684_v27 }
 0x242   : > { %688 = vadd.xlane.f32.xlu1 %v685_v28 }
 0x2cb   : > { %v687_v53 = vpop.xlane.xlu1 %686 }
 0x2cf   : > { %v689_v54 = vpop.xlane.xlu1 %688 }
 0x310   : > { %v1343_v55 = vpop.f32.mrb[2].mxu0 }
 0x311   : > { %v782_v57 = vsub.f32 %v689_v54, %v1343_v55  ;;  %v772_v58 = vpop.f32.mrb[3].mxu0 }
 0x312   : > { %v781_v59 = vsub.f32 %v687_v53, %v772_v58 }
 0x313   : > { %v791_v60 = vadd.f32 %v1187_v56, %v782_v57 }
 0x314   : > { %v790_v61 = vadd.f32 %v1187_v56, %v781_v59 }
 0x315   : > { %v793_v62 = vmax.f32 %v791_v60, 0.0 }
 0x316   : > { %v792_v63 = vmax.f32 %v790_v61, 0.0 }
 0x317   : > { %1608 = vrsqrt.f32 %v793_v62  ;;  %vm805_vm5 = vcmp.eq.f32.partialorder %v793_v62, inf  ;;  %v808_v3 = vand.u32 2147483648, %v793_v62  ;;  %vm807_vm6 = vcmp.eq.f32.partialorder %v793_v62, 0.0 }
 0x318   : > { %1610 = vrsqrt.f32 %v792_v63  ;;  %vm798_vm7 = vcmp.eq.f32.partialorder %v792_v63, inf  ;;  %v801_v7 = vand.u32 2147483648, %v792_v63  ;;  %vm800_vm8 = vcmp.eq.f32.partialorder %v792_v63, 0.0 }
 0x321   : > { %v1609_v0 = vpop.eup %1608 }
 0x322   : > { %v1611_v1 = vpop.eup %1610  ;;  %v804_v2 = vmul.f32 %v1609_v0, %v793_v62 }
 0x323   : > { %v797_v5 = vmul.f32 %v1611_v1, %v792_v63 }
 0x324   : > { %v806_v6 = vsel %vm805_vm5, %v793_v62, %v804_v2 }
 0x325   : > { %v809_v8 = vsel %vm807_vm6, %v808_v3, %v806_v6  ;;  %v799_v9 = vsel %vm798_vm7, %v792_v63, %v797_v5 }
 0x326   : > { %v812_v10 = vmul.f32 %v810_v4, %v809_v8  ;;  %v802_v11 = vsel %vm800_vm8, %v801_v7, %v799_v9 }
 0x327   : > { %v811_v12 = vmul.f32 %v810_v4, %v802_v11 }
 0x328   : > { %v815_v13 = vmul.f32 1.442695, %v812_v10 }
 0x329   : > { %v813_v14 = vmul.f32 1.442695, %v811_v12 }
 0x32b   : > { %1612 = vpow2.f32 %v813_v14 }
 0x32c   : > { %1614 = vpow2.f32 %v815_v13 }
 0x335   : > { %v1613_v15 = vpop.eup %1612 }
 0x336   : > { %v1615_v16 = vpop.eup %1614  ;;  %1376 = vmatprep.mubr.f32.mxu1 %v1613_v15 }
 0x337   : > { %1377 = vmatmul.mubr.f32.vlgmr.msra.gmra.mrb[2].mxu1 %v1615_v16 }
 0x408   : > { %926 = sbr.rel (!%p2101_p2) target bundleno = 1088 (0x440), region = 80 }
 0x40a   : > { %v1378_v18 = vpop.f32.mrb[2].mxu1 }
 0x40b   : > { %v916_v19 = vadd.f32 %v1378_v18, %v1188_v17  ;;  %v899_v20 = vpop.f32.mrb[3].mxu1 }
 0x40c   : > { %v915_v21 = vadd.f32 %v1188_v17, %v899_v20 }
 0x40d   : > { %919 = vst.msk [vmem:[%s2032_s18 + $0x8] sm:$0xff] %vm917_vm9, %v916_v19 }
 0x40e   : > { %918 = vst.msk [vmem:[%s2032_s18] sm:$0xff] %vm917_vm9, %v915_v21 }
 0x40f   : > { %s2107_s19 = smov (!%p929_p3, %s928_s19), 2 }
 0x410   : > { %s1191_s10 = sshll.u32 %s2107_s19, 7 }
 0x411   : > { %p1194_p5 = scmp.eq.s32.totalorder %s1191_s10, 0 }
 0x412   : > { %s2049_s26 = sshrl.u32 (!%p1194_p5), %s2107_s19, 1 }
 0x413   : > { %937 = sbr.rel (%p1194_p5) target bundleno = 1088 (0x440), region = 84  ;;  %p1195_p8 = scmp.le.s32.totalorder (!%p1194_p5), %s2049_s26, 0 }
 0x41a   : > { %1099 = sbr.rel (%p1195_p8) target bundleno = 1067 (0x42b), region = 161  ;;  %s1764_s3 = smov (!%p1195_p8), %s2043_s22  }
 0x41b   : > { %s1768_s28 = smov (!%p1195_p8), %s2032_s18   ;;  %s1772_s13 = smov (!%p1195_p8), 0  }
 0x41c   : > { %s1776_s30 = smov (!%p1195_p8), 0  }
 0x421 LB: >> { %v1001_v22 = vld [vmem:[%s1770_s28] sm:$0xff]  ;;  %v1003_v23 = vld [vmem:[%s1770_s28 + $0x8] sm:$0xff]  ;;  %s1005_s12 = sadd.s32 1, %s1774_s13  ;;  %s995_s30 = sadd.s32 1, %s1778_s30   ;;  %s1778_s30 = sphi %s1776_s30, %s995_s30   ;;  %s1774_s13 = sphi %s1772_s13, %s1773_s13   ;;  %s1770_s28 = sphi %s1768_s28, %s1010_s28   ;;  %s1766_s3 = sphi %s1764_s3, %s1011_s3  }
 0x422   : >> { %1002 = vst [vmem:[%s1766_s3] sm:$0xff] %v1001_v22  ;;  %1004 = vst [vmem:[%s1766_s3 + $0x8] sm:$0xff] %v1003_v23  ;;  %p1006_p10 = scmp.ge.s32.totalorder %s1005_s12, %s2049_s26  ;;  %p994_p12 = scmp.ge.s32.totalorder %s995_s30, %s2049_s26 }
 0x424   : >> { %s2109_s12 = smov (%p1006_p10, %s1005_s12), 0  ;;  %997 = sbr.rel (!%p994_p12) target bundleno = 1057 (0x421), region = 167 }
 0x425   : >> { %s1196_s15 = sshll.u32 %s2109_s12, 4  ;;  %s1773_s13 = smov %s2109_s12  }
 0x426   : >> { %s1010_s28 = scalar_lea.vmem %s2032_s18, %s1196_s15 [#allocation10]   ;;  %s1011_s3 = scalar_lea.vmem %s2043_s22, %s1196_s15  }
 0x42b PF: > { %s2059_s27 = sand.u32 1, %s2107_s19   ;;  %s1207_s29 = sshll.u32 %s2049_s26, 4 }
 0x42c   : > { %s1016_s17 = scalar_lea.vmem %s2032_s18, %s1207_s29 [#allocation10]   ;;  %s1018_s25 = scalar_lea.vmem %s2043_s22, %s1207_s29  }
 0x42d   : > { %p1201_p6 = scmp.le.s32.totalorder %s2059_s27, 0 }
 0x42e   : > { %s1780_s14 = smov (!%p1201_p6), %s1018_s25   ;;  %s1784_s16 = smov (!%p1201_p6), %s1016_s17  }
 0x42f   : > { %1113 = sbr.rel (%p1201_p6) target bundleno = 1088 (0x440), region = 172  ;;  %s1788_s23 = smov (!%p1201_p6), 0  }
 0x430   : > { %s1792_s20 = smov (!%p1201_p6), 0  }
 0x436 LB: >> { %v1028_v24 = vld [vmem:[%s1786_s16] sm:$0xff]  ;;  %s1030_s19 = sadd.s32 1, %s1790_s23  ;;  %s1022_s20 = sadd.s32 1, %s1794_s20   ;;  %s1794_s20 = sphi %s1792_s20, %s1022_s20   ;;  %s1790_s23 = sphi %s1788_s23, %s1789_s23   ;;  %s1786_s16 = sphi %s1784_s16, %s1035_s16   ;;  %s1782_s14 = sphi %s1780_s14, %s1036_s14  }
 0x437   : >> { %1029 = vst [vmem:[%s1782_s14] sm:$0xff] %v1028_v24  ;;  %p1031_p13 = scmp.ge.s32.totalorder %s1030_s19, %s2059_s27  ;;  %p1021_p0 = scmp.ge.s32.totalorder %s1022_s20, %s2059_s27 }
 0x439   : >> { %s2111_s19 = smov (%p1031_p13, %s1030_s19), 0  ;;  %1024 = sbr.rel (!%p1021_p0) target bundleno = 1078 (0x436), region = 178 }
 0x43a   : >> { %s1202_s18 = sshll.u32 %s2111_s19, 3  ;;  %s1789_s23 = smov %s2111_s19  }
 0x43b   : >> { %s1035_s16 = scalar_lea.vmem %s1016_s17, %s1202_s18 [#allocation10]   ;;  %s1036_s14 = scalar_lea.vmem %s1018_s25, %s1202_s18  }
 0x440 PF: > { %s2102_s21 = sld [smem:[#allocation13_spill]]  ;;  %p24_p11 = scmp.ge.s32.totalorder %s1885_s8, 4  }
 0x441   : > { %s2103_s23 = smov %s1758_s24  ;;  %s2105_s25 = smov %s1885_s8 }
 0x442   :  { %26 = sbr.rel (!%p24_p11) target bundleno = 6 (0x6), region = 189 }
 0x446   : > { %s2104_s24 = smov %s2102_s21 }
 0x449   :  { %1052 = vsyncpa [#allocation6], 1 }
 0x44a   :  { %1054 = vsyncpa [#allocation6 + $0x1], 1 }
 0x44b   :  { %1055 = vsyncpa [#allocation8], 1 }

// kernel: tpu_custom_call.1
= control target key start
LH: loop header
LB: loop body
LE: loop exit
PB: predicated region body
PF: predicated region fallthrough
CT: control target
= control target key end

     0   :  { %s2077_s0 = inlined_call_operand.vmem [shape: f32[20,16], index: 0, kind: input, shape index: {}]   ;;  %s2078_s1 = inlined_call_operand.vmem [shape: f32[16,128], index: 1, kind: input, shape index: {}]   ;;  %s2079_s2 = inlined_call_operand.vmem [shape: f32[1,128], index: 2, kind: input, shape index: {}]   ;;  %s2080_s3 = inlined_call_operand.<no memory space> [shape: f32[1,1], index: 3, kind: input, shape index: {}]   ;;  %s2081_s4 = inlined_call_operand.hbm [shape: f32[128,128], index: 4, kind: input, shape index: {}]   ;;  %s2082_s5 = inlined_call_operand.vmem [shape: f32[1,128], index: 5, kind: input, shape index: {}]   ;;  %s2083_s6 = inlined_call_operand.hbm [shape: f32[128,128], index: 6, kind: input, shape index: {}]   ;;  %s2084_s7 = inlined_call_operand.vmem [shape: f32[1,128], index: 7, kind: input, shape index: {}]   ;;  %s2085_s8 = inlined_call_operand.<no memory space> [shape: f32[1,1], index: 8, kind: input, shape index: {}]   ;;  %s2086_s9 = inlined_call_operand.hbm [shape: f32[128,128], index: 9, kind: input, shape index: {}]   ;;  %s2087_s10 = inlined_call_operand.<no memory space> [shape: f32[1,1], index: 10, kind: input, shape index: {}]   ;;  %s2088_s11 = inlined_call_operand.vmem [shape: f32[20,1], index: 11, kind: output, shape index: {}]  }
   0x1   :  { %16 = sst [smem:[#allocation2]] %s2080_s3  ;;  %v18_v0 = vstv %s2087_s10 }
   0x2   :  { %17 = sst [smem:[#allocation3]] %s2085_s8  ;;  %19 = vst [vmem:[#allocation4] sm:$0x1] %v18_v0 }
   0x3   :  { %20 = vsyncpa [#allocation6], 0 }
   0x4   :  { %21 = vsyncpa [#allocation8], 0  ;;  %s1870_s23 = smov 0   ;;  %s1872_s24 = smov 0  }
   0x5   :  { %s1874_s25 = smov 0  }
   0x6 LB: > { %s1883_s3 = sadd.s32 4294967295, %s1762_s25   ;;  %s1885_s8 = sadd.s32 1, %s1762_s25   ;;  %s1762_s25 = sphi %s1874_s25, %s2105_s25   ;;  %s1758_s24 = sphi %s1872_s24, %s2104_s24   ;;  %s1754_s23 = sphi %s1870_s23, %s2103_s23  }
   0x7   : > { %s267_s10 = ssub.s32 %s1762_s25, %s1885_s8  ;;  %s270_s26 = sadd.s32 1, %s1758_s24 }
   0x8   : > { %p268_p0 = scmp.eq.s32.totalorder %s267_s10, 0  ;;  %p280_p1 = scmp.ne.s32.totalorder %s1758_s24, %s1754_s23 }
   0x9   : > { %p281_p2 = scmp.eq.s32.totalorder %s1883_s3, 1  ;;  %p1171_p3 = scmp.ge.s32.totalorder %s1762_s25, 1 }
   0xa   : > { %s1893_s27 = scalar_select %p268_p0, %s1758_s24, %s270_s26  }
   0xb   : > { %p1895_p4 = por %p281_p2, %p280_p1  ;;  %p294_p5 = scmp.lt.s32.totalorder %s1762_s25, 3 }
   0xc   : > { %2091 = sst [smem:[#allocation13_spill]] %s1893_s27  ;;  %p2089_p6 = scmp.eq.s32.totalorder %s1883_s3, 0 }
   0xd   : > { %s2092_s28 = scalar_select %p1895_p4, 1, 0 }
   0xe   : > { %p1900_p7 = pnand %p1171_p3, %p294_p5  ;;  %s1796_s30 = smov [#allocation7]  }
   0xf   : > { %s331_s12 = sshll.u32 %s1796_s30, 4  ;;  %s1797_s14 = smov [#allocation5]   ;;  %s1906_s12 = int_to_ptr.vmem [resolvable:$true] %s331_s12 }
  0x10   : > { %s2093_s29 = scalar_select %p1900_p7, 1, 0 }
  0x11   : > { %p1491_p8 = pneg %p1900_p7  ;;  %s315_s15 = sshll.u32 %s1797_s14, 4  ;;  %s1914_s15 = int_to_ptr.vmem [resolvable:$true] %s315_s15 }
  0x12   : > { %s1798_s16 = smov [#allocation9]   ;;  %s1616_s20 = scalar_lea.hbm %s2083_s6, 2048 }
  0x13   : > { %p1910_p9 = pnand %p2089_p6, %p1491_p8  ;;  %s1916_s17 = sshll.u32 %s1798_s16, 4  ;;  %s351_s17 = int_to_ptr.vmem [resolvable:$true] %s1916_s17 }
  0x14   : > { %p1617_p10 = scmp.ne.s32.totalorder %s2083_s6, %s1616_s20  ;;  %p1623_p0 = scmp.lt.u32.totalorder %s1616_s20, %s2083_s6 }
  0x15   : > { %p1926_p11 = pneg %p1910_p9 }
  0x17   : > { %p1619_p12 = pnand %p1926_p11, %p1617_p10 }
  0x19   : > { %p1620_p13 = pneg %p1619_p12 }
  0x1b   : > { %p1625_p1 = pnand %p1623_p0, %p1620_p13 }
  0x1d   : > { %1628 = shalt.err (!%p1625_p1)
}
  0x1e   : > { %s1629_s30 = scalar_lea.vmem %s1906_s12, 2048  ;;  %p1637_p8 = scmp.lt.s32.totalorder %s1906_s12, %s1906_s12 }
  0x1f   : > { %p1630_p2 = scmp.ne.s32.totalorder %s1906_s12, %s1629_s30  ;;  %p1638_p6 = scmp.lt.s32.totalorder %s1629_s30, %s1629_s30 }
  0x21   : > { %p1632_p3 = pnand %p1630_p2, %p1926_p11  ;;  %p1639_p10 = por %p1638_p6, %p1637_p8 }
  0x23   : > { %p1633_p5 = pneg %p1632_p3 }
  0x25   : > { %p1640_p12 = pnand %p1639_p10, %p1633_p5 }
  0x27   : > { %1643 = shalt.err (!%p1640_p12)
}
  0x28   : > { %s1799_s14 = smov 128   ;;  %s1800_s16 = smov 8  }
  0x29   : > { %1497 = dma.hbm_to_vmem [thread:$0]  (!%p1910_p9), %s2083_s6, 2048, %s1906_s12, [#allocation8], %s1799_s14, %s1799_s14, %s1800_s16  }
  0x2a   : > { %s1644_s22 = scalar_lea.hbm %s2081_s4, 2048 }
  0x2b   : > { %p1645_p6 = scmp.ne.s32.totalorder %s2081_s4, %s1644_s22  ;;  %p1651_p1 = scmp.lt.u32.totalorder %s1644_s22, %s2081_s4 }
  0x2d   : > { %p1647_p13 = pnand %p1645_p6, %p1926_p11 }
  0x2f   : > { %p1648_p0 = pneg %p1647_p13 }
  0x31   : > { %p1653_p2 = pnand %p1651_p1, %p1648_p0 }
  0x33   : > { %1656 = shalt.err (!%p1653_p2)
}
  0x34   : > { %s1657_s12 = scalar_lea.vmem %s1914_s15, 2048  ;;  %p1665_p10 = scmp.lt.s32.totalorder %s1914_s15, %s1914_s15 }
  0x35   : > { %p1658_p3 = scmp.ne.s32.totalorder %s1914_s15, %s1657_s12  ;;  %p1666_p12 = scmp.lt.s32.totalorder %s1657_s12, %s1657_s12 }
  0x37   : > { %p1660_p5 = pnand %p1658_p3, %p1926_p11  ;;  %p1667_p6 = por %p1666_p12, %p1665_p10 }
  0x39   : > { %p1661_p8 = pneg %p1660_p5 }
  0x3b   : > { %p1668_p13 = pnand %p1667_p6, %p1661_p8 }
  0x3d   : > { %1671 = shalt.err (!%p1668_p13)
}
  0x3e   : > { %1494 = dma.hbm_to_vmem [thread:$0]  (!%p1910_p9), %s2081_s4, 2048, %s1914_s15, [#allocation6], %s1799_s14, %s1799_s14, %s1800_s16  }
  0x3f   : > { %s1672_s21 = scalar_lea.hbm %s2086_s9, 2048 }
  0x40   : > { %p1673_p0 = scmp.ne.s32.totalorder %s2086_s9, %s1672_s21  ;;  %p1679_p3 = scmp.lt.u32.totalorder %s1672_s21, %s2086_s9 }
  0x42   : > { %p1675_p1 = pnand %p1673_p0, %p1926_p11 }
  0x44   : > { %p1676_p2 = pneg %p1675_p1 }
  0x46   : > { %p1681_p5 = pnand %p1679_p3, %p1676_p2 }
  0x48   : > { %1684 = shalt.err (!%p1681_p5)
}
  0x49   : > { %s1685_s12 = scalar_lea.vmem %s351_s17, 2048  ;;  %p1693_p6 = scmp.lt.s32.totalorder %s351_s17, %s351_s17 }
  0x4a   : > { %p1686_p8 = scmp.ne.s32.totalorder %s351_s17, %s1685_s12  ;;  %p1694_p13 = scmp.lt.s32.totalorder %s1685_s12, %s1685_s12 }
  0x4c   : > { %p1688_p10 = pnand %p1686_p8, %p1926_p11  ;;  %p1695_p4 = por %p1694_p13, %p1693_p6 }
  0x4e   : > { %p1689_p12 = pneg %p1688_p10 }
  0x50   : > { %p1696_p7 = pnand %p1695_p4, %p1689_p12 }
  0x52   : > { %1699 = shalt.err (!%p1696_p7)
}
  0x53   : > { %1500 = dma.hbm_to_vmem [thread:$0]  (!%p1910_p9), %s2086_s9, 2048, %s351_s17, [#allocation8], %s1799_s14, %s1799_s14, %s1800_s16  }
  0x54   : > { %p2096_p0 = scmp.ne.s32.totalorder %s2093_s29, 0 }
  0x55   : > { %p2097_p11 = scmp.eq.s32.totalorder (!%p2096_p0), %s1883_s3, 0 }
  0x56   : > { %386 = sbr.rel (%p2096_p0) target bundleno = 1088 (0x440), region = 64 }
  0x5d   : > { %1745 = dma.done.wait (%p2097_p11), [#allocation6], 2048   ;;  %p2098_p1 = pmov %p2097_p11 }
  0x5f   : > { %1747 = vsyncadd (%p2098_p1), [#allocation6], 4294965248  ;;  %p2099_p4 = pmov %p2098_p1 }
  0x60   : > { %p2100_p7 = pmov %p2098_p1 }
  0x61   : > { %1749 = dma.done.wait (%p2099_p4), [#allocation8], 4096  }
  0x62   : > { %1751 = vsyncadd (%p2100_p7), [#allocation8], 4294963200  ;;  %s2009_s13 = sshll.u32 %s1883_s3, 1  ;;  %vm460_vm0 = vcmask 130048   ;;  %v467_v1 = vld [vmem:[%s2078_s1] sm:$0xff]  ;;  %v468_v2 = vld [vmem:[%s2078_s1 + $0x8] sm:$0xff] }
  0x63   : > { %p442_p9 = scmp.lt.s32.totalorder %s2009_s13, 2  ;;  %v1379_v4 = vpack.c.bf16 %v468_v2, %v467_v1  ;;  %v586_v10 = vld [vmem:[#allocation5] sm:$0xff]  ;;  %v587_v11 = vld [vmem:[#allocation5 + $0x8] sm:$0xff]  ;;  %v588_v13 = vld [vmem:[#allocation5 + $0x10] sm:$0xff]  ;;  %s563_s26 = sld [smem:[#allocation2]]  ;;  %vm917_vm9 = vcmask 7168  }
  0x64   : > { %v1383_v12 = vpack.c.bf16 %v587_v11, %v586_v10  ;;  %v589_v14 = vld [vmem:[#allocation5 + $0x18] sm:$0xff]  ;;  %v590_v15 = vld [vmem:[#allocation5 + $0x20] sm:$0xff]  ;;  %v591_v17 = vld [vmem:[#allocation5 + $0x28] sm:$0xff]  ;;  %s434_s14 = sand.u32 1, %s1754_s23   ;;  %p2101_p2 = scmp.ne.s32.totalorder %s2092_s28, 0 }
  0x65   : > { %s443_s29 = scalar_select %p442_p9, %s2009_s13, 2  ;;  %1380 = vmatprep.subr.bf16.mxu0 %v1379_v4  ;;  %v1387_v16 = vpack.c.bf16 %v589_v14, %v588_v13  ;;  %v1391_v18 = vpack.c.bf16 %v591_v17, %v590_v15  ;;  %v592_v19 = vld [vmem:[#allocation5 + $0x30] sm:$0xff]  ;;  %v593_v20 = vld [vmem:[#allocation5 + $0x38] sm:$0xff]  ;;  %v594_v22 = vld [vmem:[#allocation5 + $0x40] sm:$0xff] }
  0x66   : > { %1382 = vmatpush3.bf16.msra.mxu0 %v1379_v4  ;;  %1384 = vmatprep.subr.bf16.mxu1 %v1383_v12  ;;  %v1395_v21 = vpack.c.bf16 %v593_v20, %v592_v19  ;;  %v595_v23 = vld [vmem:[#allocation5 + $0x48] sm:$0xff]  ;;  %v596_v25 = vld [vmem:[#allocation5 + $0x50] sm:$0xff]  ;;  %v597_v26 = vld [vmem:[#allocation5 + $0x58] sm:$0xff]  ;;  %s928_s19 = ssub.s32 (%p2101_p2), 3, %s2009_s13  ;;  %s1206_s23 = sshll.u32 (%p2101_p2), %s1883_s3, 4 }
  0x67   : > { %s1182_s17 = sshll.u32 %s443_s29, 3  ;;  %1386 = vmatpush3.bf16.msra.mxu1 %v1383_v12  ;;  %v1399_v24 = vpack.c.bf16 %v595_v23, %v594_v22  ;;  %v1403_v27 = vpack.c.bf16 %v597_v26, %v596_v25  ;;  %v598_v28 = vld [vmem:[#allocation5 + $0x60] sm:$0xff]  ;;  %v599_v29 = vld [vmem:[#allocation5 + $0x68] sm:$0xff]  ;;  %v600_v31 = vld [vmem:[#allocation5 + $0x70] sm:$0xff]  ;;  %p929_p3 = scmp.lt.s32.totalorder (%p2101_p2), %s928_s19, 2 }
  0x68   : > { %s445_s16 = scalar_lea.vmem %s2077_s0, %s1182_s17  ;;  %1388 = vmatprep.subr.bf16.mxu1 %v1387_v16  ;;  %v1407_v30 = vpack.c.bf16 %v599_v29, %v598_v28  ;;  %v601_v32 = vld [vmem:[#allocation5 + $0x78] sm:$0xff]  ;;  %v690_v34 = vld [vmem:[#allocation7] sm:$0xff]  ;;  %v691_v35 = vld [vmem:[#allocation7 + $0x8] sm:$0xff]  ;;  %s794_s17 = sld [smem:[#allocation3]] }
  0x69   : > { %v456_v3 = vld [vmem:[%s445_s16] sm:$0xff]  ;;  %v457_v5 = vld [vmem:[%s445_s16 + $0x8] sm:$0xff]  ;;  %v1411_v33 = vpack.c.bf16 %v601_v32, %v600_v31  ;;  %v692_v36 = vld [vmem:[#allocation7 + $0x10] sm:$0xff]  ;;  %v1415_v37 = vpack.c.bf16 %v691_v35, %v690_v34  ;;  %s564_s30 = ssub.f32 0.0, %s563_s26  ;;  %s1180_s16 = sshll.u32 %s434_s14, 4 }
  0x6a   : > { %v458_v6 = vmul.f32 %v456_v3, %v456_v3  ;;  %1271 = vmatprep.mubr.msk.f32.mxu0 %vm460_vm0, %v456_v3  ;;  %v459_v7 = vmul.f32 %v457_v5, %v457_v5  ;;  %v693_v38 = vld [vmem:[#allocation7 + $0x18] sm:$0xff]  ;;  %v694_v40 = vld [vmem:[#allocation7 + $0x20] sm:$0xff]  ;;  %v695_v41 = vld [vmem:[#allocation7 + $0x28] sm:$0xff]  ;;  %s2032_s18 = scalar_lea.vmem [#allocation10], %s1180_s16   ;;  %s2043_s22 = scalar_lea.vmem (%p2101_p2), %s2088_s11, %s1206_s23  }
  0x6b   : > { %1272 = vmatmul.mubr.msk.f32.vlgmr.msra.gmra.mrb[0].mxu0 %vm460_vm0, %v457_v5  ;;  %1390 = vmatpush3.bf16.msra.mxu1 %v1387_v16  ;;  %v1419_v39 = vpack.c.bf16 %v693_v38, %v692_v36  ;;  %v1423_v42 = vpack.c.bf16 %v695_v41, %v694_v40  ;;  %v696_v43 = vld [vmem:[#allocation7 + $0x30] sm:$0xff]  ;;  %v697_v44 = vld [vmem:[#allocation7 + $0x38] sm:$0xff]  ;;  %v698_v46 = vld [vmem:[#allocation7 + $0x40] sm:$0xff] }
  0x6c   : > { %v461_v8 = vsel %vm460_vm0, %v458_v6, 0.0  ;;  %v464_v9 = vsel %vm460_vm0, %v459_v7, 0.0  ;;  %1392 = vmatprep.subr.bf16.mxu1 %v1391_v18  ;;  %1416 = vmatprep.subr.bf16.mxu0 %v1415_v37  ;;  %v1427_v45 = vpack.c.bf16 %v697_v44, %v696_v43  ;;  %v699_v47 = vld [vmem:[#allocation7 + $0x48] sm:$0xff]  ;;  %v700_v49 = vld [vmem:[#allocation7 + $0x50] sm:$0xff]  ;;  %v701_v50 = vld [vmem:[#allocation7 + $0x58] sm:$0xff]  ;;  %v579_v7 = vstv %s564_s30 }
  0x6d   : > { %462 = vadd.xlane.f32.xlu0 %v461_v8  ;;  %1418 = vmatpush3.bf16.msra.mxu0 %v1415_v37  ;;  %v1431_v48 = vpack.c.bf16 %v699_v47, %v698_v46  ;;  %v1435_v51 = vpack.c.bf16 %v701_v50, %v700_v49  ;;  %v702_v52 = vld [vmem:[#allocation7 + $0x60] sm:$0xff]  ;;  %v703_v53 = vld [vmem:[#allocation7 + $0x68] sm:$0xff]  ;;  %v1185_v58 = vld [vmem:[%s2079_s2] ss:$0 sm:$0xff] }
  0x6e   : > { %1420 = vmatprep.subr.bf16.mxu0 %v1419_v39  ;;  %v1439_v54 = vpack.c.bf16 %v703_v53, %v702_v52  ;;  %v704_v19 = vld [vmem:[#allocation7 + $0x70] sm:$0xff]  ;;  %v705_v20 = vld [vmem:[#allocation7 + $0x78] sm:$0xff]  ;;  %v817_v29 = vld [vmem:[#allocation9] sm:$0xff]  ;;  %s795_s25 = ssub.f32 0.0, %s794_s17 }
  0x6f   : > { %1394 = vmatpush3.bf16.msra.mxu1 %v1391_v18  ;;  %v1186_v22 = vld [vmem:[%s2082_s5] ss:$0 sm:$0xff]  ;;  %v819_v32 = vld [vmem:[#allocation9 + $0x10] sm:$0xff]  ;;  %v821_v35 = vld [vmem:[#allocation9 + $0x20] sm:$0xff] }
  0x70   : > { %1396 = vmatprep.subr.bf16.mxu1 %v1395_v21  ;;  %v822_v36 = vld [vmem:[#allocation9 + $0x28] sm:$0xff]  ;;  %v823_v38 = vld [vmem:[#allocation9 + $0x30] sm:$0xff]  ;;  %v825_v41 = vld [vmem:[#allocation9 + $0x40] sm:$0xff] }
  0x71   : > { %465 = vadd.xlane.f32.xlu0 %v464_v9  ;;  %1422 = vmatpush3.bf16.msra.mxu0 %v1419_v39  ;;  %v1455_v37 = vpack.c.bf16 %v822_v36, %v821_v35  ;;  %v824_v39 = vld [vmem:[#allocation9 + $0x38] sm:$0xff]  ;;  %v827_v44 = vld [vmem:[#allocation9 + $0x50] sm:$0xff]  ;;  %v829_v47 = vld [vmem:[#allocation9 + $0x60] sm:$0xff] }
  0x72   : > { %1424 = vmatprep.subr.bf16.mxu0 %v1423_v42  ;;  %v1459_v40 = vpack.c.bf16 %v824_v39, %v823_v38  ;;  %v831_v49 = vld [vmem:[#allocation9 + $0x70] sm:$0xff] }
  0x73   : > { %1398 = vmatpush3.bf16.msra.mxu1 %v1395_v21  ;;  %v1443_v21 = vpack.c.bf16 %v705_v20, %v704_v19 }
  0x74   : > { %1400 = vmatprep.subr.bf16.mxu1 %v1399_v24 }
  0x75   : > { %1426 = vmatpush3.bf16.msra.mxu0 %v1423_v42  ;;  %v826_v42 = vld [vmem:[#allocation9 + $0x48] sm:$0xff] }
  0x76   : > { %1428 = vmatprep.subr.bf16.mxu0 %v1427_v45  ;;  %v1463_v43 = vpack.c.bf16 %v826_v42, %v825_v41 }
  0x77   : > { %1402 = vmatpush3.bf16.msra.mxu1 %v1399_v24 }
  0x78   : > { %1404 = vmatprep.subr.bf16.mxu1 %v1403_v27 }
  0x79   : > { %1430 = vmatpush3.bf16.msra.mxu0 %v1427_v45  ;;  %v828_v45 = vld [vmem:[#allocation9 + $0x58] sm:$0xff] }
  0x7a   : > { %1432 = vmatprep.subr.bf16.mxu0 %v1431_v48  ;;  %v1467_v46 = vpack.c.bf16 %v828_v45, %v827_v44 }
  0x7b   : > { %1406 = vmatpush3.bf16.msra.mxu1 %v1403_v27 }
  0x7c   : > { %1408 = vmatprep.subr.bf16.mxu1 %v1407_v30 }
  0x7d   : > { %1434 = vmatpush3.bf16.msra.mxu0 %v1431_v48  ;;  %v830_v48 = vld [vmem:[#allocation9 + $0x68] sm:$0xff] }
  0x7e   : > { %1436 = vmatprep.subr.bf16.mxu0 %v1435_v51  ;;  %v1471_v50 = vpack.c.bf16 %v830_v48, %v829_v47 }
  0x7f   : > { %1410 = vmatpush3.bf16.msra.mxu1 %v1407_v30  ;;  %v818_v30 = vld [vmem:[#allocation9 + $0x8] sm:$0xff] }
  0x80   : > { %1412 = vmatprep.subr.bf16.mxu1 %v1411_v33  ;;  %v1447_v31 = vpack.c.bf16 %v818_v30, %v817_v29 }
  0x81   : > { %1438 = vmatpush3.bf16.msra.mxu0 %v1435_v51  ;;  %v832_v51 = vld [vmem:[#allocation9 + $0x78] sm:$0xff] }
  0x82   : > { %1440 = vmatprep.subr.bf16.mxu0 %v1439_v54  ;;  %v1475_v52 = vpack.c.bf16 %v832_v51, %v831_v49 }
  0x83   : > { %1414 = vmatpush3.bf16.msra.mxu1 %v1411_v33  ;;  %v820_v33 = vld [vmem:[#allocation9 + $0x18] sm:$0xff] }
  0x84   : > { %1448 = vmatprep.subr.bf16.mxu1 %v1447_v31  ;;  %v1451_v34 = vpack.c.bf16 %v820_v33, %v819_v32 }
  0x85   : > { %1442 = vmatpush3.bf16.msra.mxu0 %v1439_v54 }
  0x86   : > { %1444 = vmatprep.subr.bf16.mxu0 %v1443_v21 }
  0x89   : > { %1446 = vmatpush3.bf16.msra.mxu0 %v1443_v21 }
  0xfa   : > { %v463_v55 = vpop.xlane.xlu0 %462 }
  0xfe   : > { %v466_v56 = vpop.xlane.xlu0 %465 }
 0x13e   : > { %v1273_v57 = vpop.f32.mrb[0].mxu0 }
 0x13f   : > { %v551_v59 = vsub.f32 %v466_v56, %v1273_v57  ;;  %v541_v60 = vpop.f32.mrb[1].mxu0  ;;  %v1187_v56 = vld [vmem:[%s2084_s7] ss:$0 sm:$0xff] }
 0x140   : > { %v550_v61 = vsub.f32 %v463_v55, %v541_v60 }
 0x141   : > { %v560_v62 = vadd.f32 %v1185_v58, %v551_v59 }
 0x142   : > { %v559_v63 = vadd.f32 %v1185_v58, %v550_v61 }
 0x143   : > { %v562_v0 = vmax.f32 %v560_v62, 0.0 }
 0x144   : > { %v561_v1 = vmax.f32 %v559_v63, 0.0 }
 0x145   : > { %1600 = vrsqrt.f32 %v562_v0  ;;  %vm574_vm1 = vcmp.eq.f32.partialorder %v562_v0, inf  ;;  %v577_v6 = vand.u32 2147483648, %v562_v0  ;;  %vm576_vm3 = vcmp.eq.f32.partialorder %v562_v0, 0.0 }
 0x146   : > { %1602 = vrsqrt.f32 %v561_v1  ;;  %vm567_vm2 = vcmp.eq.f32.partialorder %v561_v1, inf  ;;  %v570_v8 = vand.u32 2147483648, %v561_v1  ;;  %vm569_vm4 = vcmp.eq.f32.partialorder %v561_v1, 0.0 }
 0x14f   : > { %v1601_v2 = vpop.eup %1600 }
 0x150   : > { %v1603_v3 = vpop.eup %1602  ;;  %v573_v4 = vmul.f32 %v1601_v2, %v562_v0 }
 0x151   : > { %v566_v5 = vmul.f32 %v1603_v3, %v561_v1 }
 0x152   : > { %v575_v9 = vsel %vm574_vm1, %v562_v0, %v573_v4  ;;  %v810_v4 = vstv %s795_s25 }
 0x153   : > { %v568_v10 = vsel %vm567_vm2, %v561_v1, %v566_v5  ;;  %v578_v11 = vsel %vm576_vm3, %v577_v6, %v575_v9 }
 0x154   : > { %v571_v12 = vsel %vm569_vm4, %v570_v8, %v568_v10  ;;  %v581_v13 = vmul.f32 %v579_v7, %v578_v11 }
 0x155   : > { %v580_v14 = vmul.f32 %v579_v7, %v571_v12 }
 0x156   : > { %v584_v15 = vmul.f32 1.442695, %v581_v13 }
 0x157   : > { %v582_v16 = vmul.f32 1.442695, %v580_v14 }
 0x159   : > { %1604 = vpow2.f32 %v582_v16 }
 0x15a   : > { %1606 = vpow2.f32 %v584_v15 }
 0x163   : > { %v1605_v17 = vpop.eup %1604 }
 0x164   : > { %v1607_v18 = vpop.eup %1606  ;;  %1306 = vmatprep.mubr.f32.mxu1 %v1605_v17  ;;  %v1188_v17 = vld [vmem:[#allocation4] ss:$0 sm:$0xff] }
 0x165   : > { %1307 = vmatmul.mubr.f32.vlgmr.msra.gmra.mrb[0].mxu1 %v1607_v18 }
 0x166   : > { %1450 = vmatpush3.bf16.msra.mxu1 %v1447_v31 }
 0x167   : > { %1452 = vmatprep.subr.bf16.mxu1 %v1451_v34 }
 0x16a   : > { %1454 = vmatpush3.bf16.msra.mxu1 %v1451_v34 }
 0x16b   : > { %1456 = vmatprep.subr.bf16.mxu1 %v1455_v37 }
 0x16e   : > { %1458 = vmatpush3.bf16.msra.mxu1 %v1455_v37 }
 0x16f   : > { %1460 = vmatprep.subr.bf16.mxu1 %v1459_v40 }
 0x172   : > { %1462 = vmatpush3.bf16.msra.mxu1 %v1459_v40 }
 0x173   : > { %1464 = vmatprep.subr.bf16.mxu1 %v1463_v43 }
 0x176   : > { %1466 = vmatpush3.bf16.msra.mxu1 %v1463_v43 }
 0x177   : > { %1468 = vmatprep.subr.bf16.mxu1 %v1467_v46 }
 0x17a   : > { %1470 = vmatpush3.bf16.msra.mxu1 %v1467_v46 }
 0x17b   : > { %1472 = vmatprep.subr.bf16.mxu1 %v1471_v50 }
 0x17e   : > { %1474 = vmatpush3.bf16.msra.mxu1 %v1471_v50 }
 0x17f   : > { %1476 = vmatprep.subr.bf16.mxu1 %v1475_v52 }
 0x182   : > { %1478 = vmatpush3.bf16.msra.mxu1 %v1475_v52 }
 0x238   : > { %v1308_v23 = vpop.f32.mrb[0].mxu1 }
 0x239   : > { %v675_v24 = vpop.f32.mrb[1].mxu1  ;;  %v681_v26 = vadd.f32 %v1308_v23, %v1186_v22 }
 0x23a   : > { %v676_v25 = vadd.f32 %v1186_v22, %v675_v24 }
 0x23b   : > { %v685_v28 = vmul.f32 %v681_v26, %v681_v26 }
 0x23c   : > { %1341 = vmatprep.mubr.f32.mxu0 %v676_v25  ;;  %v684_v27 = vmul.f32 %v676_v25, %v676_v25 }
 0x23d   : > { %1342 = vmatmul.mubr.f32.vlgmr.msra.gmra.mrb[2].mxu0 %v681_v26 }
 0x23e   : > { %686 = vadd.xlane.f32.xlu1 %v684_v27 }
 0x242   : > { %688 = vadd.xlane.f32.xlu1 %v685_v28 }
 0x2cb   : > { %v687_v53 = vpop.xlane.xlu1 %686 }
 0x2cf   : > { %v689_v54 = vpop.xlane.xlu1 %688 }
 0x310   : > { %v1343_v55 = vpop.f32.mrb[2].mxu0 }
 0x311   : > { %v782_v57 = vsub.f32 %v689_v54, %v1343_v55  ;;  %v772_v58 = vpop.f32.mrb[3].mxu0 }
 0x312   : > { %v781_v59 = vsub.f32 %v687_v53, %v772_v58 }
 0x313   : > { %v791_v60 = vadd.f32 %v1187_v56, %v782_v57 }
 0x314   : > { %v790_v61 = vadd.f32 %v1187_v56, %v781_v59 }
 0x315   : > { %v793_v62 = vmax.f32 %v791_v60, 0.0 }
 0x316   : > { %v792_v63 = vmax.f32 %v790_v61, 0.0 }
 0x317   : > { %1608 = vrsqrt.f32 %v793_v62  ;;  %vm805_vm5 = vcmp.eq.f32.partialorder %v793_v62, inf  ;;  %v808_v3 = vand.u32 2147483648, %v793_v62  ;;  %vm807_vm6 = vcmp.eq.f32.partialorder %v793_v62, 0.0 }
 0x318   : > { %1610 = vrsqrt.f32 %v792_v63  ;;  %vm798_vm7 = vcmp.eq.f32.partialorder %v792_v63, inf  ;;  %v801_v7 = vand.u32 2147483648, %v792_v63  ;;  %vm800_vm8 = vcmp.eq.f32.partialorder %v792_v63, 0.0 }
 0x321   : > { %v1609_v0 = vpop.eup %1608 }
 0x322   : > { %v1611_v1 = vpop.eup %1610  ;;  %v804_v2 = vmul.f32 %v1609_v0, %v793_v62 }
 0x323   : > { %v797_v5 = vmul.f32 %v1611_v1, %v792_v63 }
 0x324   : > { %v806_v6 = vsel %vm805_vm5, %v793_v62, %v804_v2 }
 0x325   : > { %v809_v8 = vsel %vm807_vm6, %v808_v3, %v806_v6  ;;  %v799_v9 = vsel %vm798_vm7, %v792_v63, %v797_v5 }
 0x326   : > { %v812_v10 = vmul.f32 %v810_v4, %v809_v8  ;;  %v802_v11 = vsel %vm800_vm8, %v801_v7, %v799_v9 }
 0x327   : > { %v811_v12 = vmul.f32 %v810_v4, %v802_v11 }
 0x328   : > { %v815_v13 = vmul.f32 1.442695, %v812_v10 }
 0x329   : > { %v813_v14 = vmul.f32 1.442695, %v811_v12 }
 0x32b   : > { %1612 = vpow2.f32 %v813_v14 }
 0x32c   : > { %1614 = vpow2.f32 %v815_v13 }
 0x335   : > { %v1613_v15 = vpop.eup %1612 }
 0x336   : > { %v1615_v16 = vpop.eup %1614  ;;  %1376 = vmatprep.mubr.f32.mxu1 %v1613_v15 }
 0x337   : > { %1377 = vmatmul.mubr.f32.vlgmr.msra.gmra.mrb[2].mxu1 %v1615_v16 }
 0x408   : > { %926 = sbr.rel (!%p2101_p2) target bundleno = 1088 (0x440), region = 80 }
 0x40a   : > { %v1378_v18 = vpop.f32.mrb[2].mxu1 }
 0x40b   : > { %v916_v19 = vadd.f32 %v1378_v18, %v1188_v17  ;;  %v899_v20 = vpop.f32.mrb[3].mxu1 }
 0x40c   : > { %v915_v21 = vadd.f32 %v1188_v17, %v899_v20 }
 0x40d   : > { %919 = vst.msk [vmem:[%s2032_s18 + $0x8] sm:$0xff] %vm917_vm9, %v916_v19 }
 0x40e   : > { %918 = vst.msk [vmem:[%s2032_s18] sm:$0xff] %vm917_vm9, %v915_v21 }
 0x40f   : > { %s2107_s19 = smov (!%p929_p3, %s928_s19), 2 }
 0x410   : > { %s1191_s10 = sshll.u32 %s2107_s19, 7 }
 0x411   : > { %p1194_p5 = scmp.eq.s32.totalorder %s1191_s10, 0 }
 0x412   : > { %s2049_s26 = sshrl.u32 (!%p1194_p5), %s2107_s19, 1 }
 0x413   : > { %937 = sbr.rel (%p1194_p5) target bundleno = 1088 (0x440), region = 84  ;;  %p1195_p8 = scmp.le.s32.totalorder (!%p1194_p5), %s2049_s26, 0 }
 0x41a   : > { %1099 = sbr.rel (%p1195_p8) target bundleno = 1067 (0x42b), region = 161  ;;  %s1764_s3 = smov (!%p1195_p8), %s2043_s22  }
 0x41b   : > { %s1768_s28 = smov (!%p1195_p8), %s2032_s18   ;;  %s1772_s13 = smov (!%p1195_p8), 0  }
 0x41c   : > { %s1776_s30 = smov (!%p1195_p8), 0  }
 0x421 LB: >> { %v1001_v22 = vld [vmem:[%s1770_s28] sm:$0xff]  ;;  %v1003_v23 = vld [vmem:[%s1770_s28 + $0x8] sm:$0xff]  ;;  %s1005_s12 = sadd.s32 1, %s1774_s13  ;;  %s995_s30 = sadd.s32 1, %s1778_s30   ;;  %s1778_s30 = sphi %s1776_s30, %s995_s30   ;;  %s1774_s13 = sphi %s1772_s13, %s1773_s13   ;;  %s1770_s28 = sphi %s1768_s28, %s1010_s28   ;;  %s1766_s3 = sphi %s1764_s3, %s1011_s3  }
 0x422   : >> { %1002 = vst [vmem:[%s1766_s3] sm:$0xff] %v1001_v22  ;;  %1004 = vst [vmem:[%s1766_s3 + $0x8] sm:$0xff] %v1003_v23  ;;  %p1006_p10 = scmp.ge.s32.totalorder %s1005_s12, %s2049_s26  ;;  %p994_p12 = scmp.ge.s32.totalorder %s995_s30, %s2049_s26 }
 0x424   : >> { %s2109_s12 = smov (%p1006_p10, %s1005_s12), 0  ;;  %997 = sbr.rel (!%p994_p12) target bundleno = 1057 (0x421), region = 167 }
 0x425   : >> { %s1196_s15 = sshll.u32 %s2109_s12, 4  ;;  %s1773_s13 = smov %s2109_s12  }
 0x426   : >> { %s1010_s28 = scalar_lea.vmem %s2032_s18, %s1196_s15 [#allocation10]   ;;  %s1011_s3 = scalar_lea.vmem %s2043_s22, %s1196_s15  }
 0x42b PF: > { %s2059_s27 = sand.u32 1, %s2107_s19   ;;  %s1207_s29 = sshll.u32 %s2049_s26, 4 }
 0x42c   : > { %s1016_s17 = scalar_lea.vmem %s2032_s18, %s1207_s29 [#allocation10]   ;;  %s1018_s25 = scalar_lea.vmem %s2043_s22, %s1207_s29  }
 0x42d   : > { %p1201_p6 = scmp.le.s32.totalorder %s2059_s27, 0 }
 0x42e   : > { %s1780_s14 = smov (!%p1201_p6), %s1018_s25   ;;  %s1784_s16 = smov (!%p1201_p6), %s1016_s17  }
 0x42f   : > { %1113 = sbr.rel (%p1201_p6) target bundleno = 1088 (0x440), region = 172  ;;  %s1788_s23 = smov (!%p1201_p6), 0  }
 0x430   : > { %s1792_s20 = smov (!%p1201_p6), 0  }
 0x436 LB: >> { %v1028_v24 = vld [vmem:[%s1786_s16] sm:$0xff]  ;;  %s1030_s19 = sadd.s32 1, %s1790_s23  ;;  %s1022_s20 = sadd.s32 1, %s1794_s20   ;;  %s1794_s20 = sphi %s1792_s20, %s1022_s20   ;;  %s1790_s23 = sphi %s1788_s23, %s1789_s23   ;;  %s1786_s16 = sphi %s1784_s16, %s1035_s16   ;;  %s1782_s14 = sphi %s1780_s14, %s1036_s14  }
 0x437   : >> { %1029 = vst [vmem:[%s1782_s14] sm:$0xff] %v1028_v24  ;;  %p1031_p13 = scmp.ge.s32.totalorder %s1030_s19, %s2059_s27  ;;  %p1021_p0 = scmp.ge.s32.totalorder %s1022_s20, %s2059_s27 }
 0x439   : >> { %s2111_s19 = smov (%p1031_p13, %s1030_s19), 0  ;;  %1024 = sbr.rel (!%p1021_p0) target bundleno = 1078 (0x436), region = 178 }
 0x43a   : >> { %s1202_s18 = sshll.u32 %s2111_s19, 3  ;;  %s1789_s23 = smov %s2111_s19  }
 0x43b   : >> { %s1035_s16 = scalar_lea.vmem %s1016_s17, %s1202_s18 [#allocation10]   ;;  %s1036_s14 = scalar_lea.vmem %s1018_s25, %s1202_s18  }
 0x440 PF: > { %s2102_s21 = sld [smem:[#allocation13_spill]]  ;;  %p24_p11 = scmp.ge.s32.totalorder %s1885_s8, 4  }
 0x441   : > { %s2103_s23 = smov %s1758_s24  ;;  %s2105_s25 = smov %s1885_s8 }
 0x442   :  { %26 = sbr.rel (!%p24_p11) target bundleno = 6 (0x6), region = 189 }
 0x446   : > { %s2104_s24 = smov %s2102_s21 }
 0x449   :  { %1052 = vsyncpa [#allocation6], 1 }
 0x44a   :  { %1054 = vsyncpa [#allocation6 + $0x1], 1 }
 0x44b   :  { %1055 = vsyncpa [#allocation8], 1 }

</bundles_post_ra>
